<compile_context>
chip_gen: v6e
topology: v6e:2x2x1
jax: 0.10.0
libtpu: 0.0.40
codegen_flags: <defaults>
</compile_context>

<pallas_src>
import jax
import jax.numpy as jnp
import numpy as np
from jax import lax
from jax.experimental import pallas as pl
from jax.experimental.pallas import tpu as pltpu


def _mm(a, b):
  """MXU matmul with f32 accumulation (operands pre-cast by caller)."""
  return lax.dot_general(a, b, (((1,), (0,)), ((), ())),
                         preferred_element_type=jnp.float32)


def _decoder_kernel(x_ref, hdec_ref, h0_ref, h1_ref, enc_ref,
                    w_attn_ref, w_gru_ref, b_gru_ref, vec_ref, w_out_ref,
                    pred_ref, h0n_ref, h1n_ref, a_ref):
  f32, bf16 = jnp.float32, jnp.bfloat16
  B, H = h0_ref.shape
  BS = enc_ref.shape[0]
  S2 = BS // B
  H2, H3 = 2 * H, 3 * H

  x = x_ref[...]                       # (B, 1)  f32
  hdec_bf = hdec_ref[...]              # (B, H)  bf16
  h0 = h0_ref[...]                     # (B, H)  f32
  h1 = h1_ref[...]                     # (B, H)  f32
  enc_bf = enc_ref[...]                # (BS,2H) bf16, row = b*S2 + s
  enc_f = enc_bf.astype(f32)

  w_indec = vec_ref[0]                 # (1, H) f32
  b_indec = vec_ref[1]
  b_attn = vec_ref[2]
  v_attn = vec_ref[3]
  b_out = vec_ref[4][:, 0:1]           # (1, 1)
  w_out = w_out_ref[...]               # (1, 4H) f32

  # embedded = dropout(tanh(input_dec(x)))   (dropout == identity, eval mode)
  emb = jnp.tanh(x * w_indec + b_indec)                               # (B, H)

  # 0/1 batch<->row maps, generated in-kernel (no HBM operands, VPU-cheap).
  ri = lax.broadcasted_iota(jnp.int32, (BS, B), 0)
  ci = lax.broadcasted_iota(jnp.int32, (BS, B), 1)
  rep_b = (ri >= ci * S2) & (ri < (ci + 1) * S2)                      # (BS, B)
  rep_f = rep_b.astype(f32)
  ra = lax.broadcasted_iota(jnp.int32, (B, BS), 0)
  ca = lax.broadcasted_iota(jnp.int32, (B, BS), 1)
  agg_f = ((ca >= ra * S2) & (ca < (ra + 1) * S2)).astype(f32)        # (B, BS)

  # ---- additive attention; per-batch softmax done fully in f32 ------------
  hdec_proj = _mm(hdec_bf, w_attn_ref[0:H, :]) + b_attn               # (B, H)
  enc_proj = _mm(enc_bf, w_attn_ref[H:H3, :])                         # (BS, H)
  energy = jnp.tanh(enc_proj + _mm(rep_f, hdec_proj))                 # (BS, H)
  score = jnp.sum(energy * v_attn, axis=1, keepdims=True)             # (BS, 1)
  m_b = jnp.max(jnp.where(rep_b, score, -1e30), axis=0, keepdims=True)  # (1, B)
  e = jnp.exp(score - jnp.sum(rep_f * m_b, axis=1, keepdims=True))    # (BS, 1)
  denom = jnp.sum(rep_f * e, axis=0, keepdims=True)                   # (1, B)
  inv = 1.0 / denom                                                   # exact
  a = e * jnp.sum(rep_f * inv, axis=1, keepdims=True)                 # (BS, 1)
  # weighted context: bf16-rounded attention weights (matches reference),
  # exact 0/1 aggregation with f32 accumulation.
  a_bf = a.astype(bf16).astype(f32)
  weighted = _mm(agg_f, a_bf * enc_f)                                 # (B, 2H)

  # ---- 2-layer GRU, one step; gates fused along N as (K, 3H) matmuls ------
  emb_bf = emb.astype(bf16)
  weighted_bf = weighted.astype(bf16)
  h0_bf = h0.astype(bf16)
  h1_bf = h1.astype(bf16)

  gi0 = (_mm(emb_bf, w_gru_ref[0:H, :])
         + _mm(weighted_bf, w_gru_ref[H:H3, :]) + b_gru_ref[0])       # (B, 3H)
  gh0 = _mm(h0_bf, w_gru_ref[H3:H3 + H, :]) + b_gru_ref[1]            # (B, 3H)
  r0 = jax.nn.sigmoid(gi0[:, 0:H] + gh0[:, 0:H])
  z0 = jax.nn.sigmoid(gi0[:, H:H2] + gh0[:, H:H2])
  n0 = jnp.tanh(gi0[:, H2:H3] + r0 * gh0[:, H2:H3])
  h0n = (1.0 - z0) * n0 + z0 * h0

  h0n_bf = h0n.astype(bf16)
  gi1 = _mm(h0n_bf, w_gru_ref[H3 + H:H3 + H2, :]) + b_gru_ref[2]      # (B, 3H)
  gh1 = _mm(h1_bf, w_gru_ref[H3 + H2:H3 + H3, :]) + b_gru_ref[3]      # (B, 3H)
  r1 = jax.nn.sigmoid(gi1[:, 0:H] + gh1[:, 0:H])
  z1 = jax.nn.sigmoid(gi1[:, H:H2] + gh1[:, H:H2])
  n1 = jnp.tanh(gi1[:, H2:H3] + r1 * gh1[:, H2:H3])
  h1n = (1.0 - z1) * n1 + z1 * h1

  # ---- out = Linear(cat(gru_out, weighted, embedded)) ---------------------
  pred = (jnp.sum(h1n * w_out[:, 0:H], axis=1, keepdims=True)
          + jnp.sum(weighted * w_out[:, H:H3], axis=1, keepdims=True)
          + jnp.sum(emb * w_out[:, H3:H3 + H], axis=1, keepdims=True)
          + b_out)

  pred_ref[...] = pred
  h0n_ref[...] = h0n
  h1n_ref[...] = h1n
  a_ref[...] = a


def _prepare_params(p, H):
  """Host-side packing of the many tiny weights into 5 operands (free)."""
  bf, f32 = jnp.bfloat16, jnp.float32
  w_attn = p['w_attn'].astype(bf)                                     # (3H, H)
  w_gru = jnp.concatenate(
      [p['w_ih0'], p['w_hh0'], p['w_ih1'], p['w_hh1']], axis=0).astype(bf)  # (6H, 3H)
  b_gru = jnp.stack(
      [p['b_ih0'], p['b_hh0'], p['b_ih1'], p['b_hh1']], axis=0).astype(f32)  # (4, 1, 3H)
  b_out_row = jnp.pad(p['b_out'].astype(f32), ((0, 0), (0, H - 1)))   # (1, H)
  vec_h = jnp.stack(
      [p['w_indec'], p['b_indec'], p['b_attn'], p['v_attn'], b_out_row],
      axis=0).astype(f32)                                             # (5, 1, H)
  w_out = p['w_out'].astype(f32)                                      # (1, 4H)
  return w_attn, w_gru, b_gru, vec_h, w_out


def decoder_forward(x, hidden, hidden_decoder, enc_left, enc_right, p):
  """Mirrors Decoder.forward. Returns (pred (B,), hidden (2,B,H), a (B, 2S))."""
  B = x.shape[0]
  H = hidden_decoder.shape[1]
  enc = jnp.concatenate([enc_left, enc_right], axis=0)                # (S2, B, 2H)
  S2 = enc.shape[0]
  enc_bt = jnp.transpose(enc, (1, 0, 2)).reshape(B * S2, 2 * H)       # row = b*S2+s

  w_attn, w_gru, b_gru, vec_h, w_out = _prepare_params(p, H)
  args = (x[:, None].astype(jnp.float32),
          hidden_decoder.astype(jnp.bfloat16),
          hidden[0].astype(jnp.float32), hidden[1].astype(jnp.float32),
          enc_bt.astype(jnp.bfloat16),
          w_attn, w_gru, b_gru, vec_h, w_out)

  vmem = pl.BlockSpec(memory_space=pltpu.MemorySpace.VMEM)
  pred, h0n, h1n, a_flat = pl.pallas_call(
      _decoder_kernel,
      out_shape=(
          jax.ShapeDtypeStruct((B, 1), jnp.float32),
          jax.ShapeDtypeStruct((B, H), jnp.float32),
          jax.ShapeDtypeStruct((B, H), jnp.float32),
          jax.ShapeDtypeStruct((B * S2, 1), jnp.float32),
      ),
      in_specs=[vmem] * len(args),
      out_specs=(vmem, vmem, vmem, vmem),
  )(*args)

  return pred[:, 0], jnp.stack([h0n, h1n], axis=0), a_flat.reshape(B, S2)


# ----------------------------- pure-JAX reference ---------------------------
def _mm_ref(x, w):
  return jnp.dot(x.astype(jnp.bfloat16), w.astype(jnp.bfloat16),
                 preferred_element_type=jnp.float32)


def reference_forward(x, hidden, hidden_decoder, enc_left, enc_right, p):
  """Pure-JAX reference following the PyTorch forward (bf16 matmul operands)."""
  B = x.shape[0]
  H = hidden_decoder.shape[1]
  emb = jnp.tanh(x[:, None] * p['w_indec'] + p['b_indec'])            # (B, H)
  enc = jnp.concatenate([enc_left, enc_right], axis=0)                # (S2, B, 2H)
  S2 = enc.shape[0]
  enc_bt = jnp.transpose(enc, (1, 0, 2))                              # (B, S2, 2H)
  hid_rep = jnp.broadcast_to(hidden_decoder[:, None, :], (B, S2, H))
  cat = jnp.concatenate([hid_rep, enc_bt], axis=2)                    # (B, S2, 3H)
  energy = jnp.tanh(
      _mm_ref(cat.reshape(B * S2, 3 * H), p['w_attn']).reshape(B, S2, H)
      + p['b_attn'])
  score = jnp.sum(energy * p['v_attn'][None], axis=2)                 # (B, S2)
  a = jax.nn.softmax(score, axis=1)
  weighted = jnp.einsum('bs,bse->be', a.astype(jnp.bfloat16),
                        enc_bt.astype(jnp.bfloat16),
                        preferred_element_type=jnp.float32)           # (B, 2H)
  gru_in = jnp.concatenate([emb, weighted], axis=1)

  def gru_cell(xin, h, w_ih, w_hh, b_ih, b_hh):
    gi = _mm_ref(xin, w_ih) + b_ih
    gh = _mm_ref(h, w_hh) + b_hh
    r = jax.nn.sigmoid(gi[:, 0:H] + gh[:, 0:H])
    z = jax.nn.sigmoid(gi[:, H:2 * H] + gh[:, H:2 * H])
    n = jnp.tanh(gi[:, 2 * H:3 * H] + r * gh[:, 2 * H:3 * H])
    return (1.0 - z) * n + z * h

  h0n = gru_cell(gru_in, hidden[0], p['w_ih0'], p['w_hh0'], p['b_ih0'], p['b_hh0'])
  h1n = gru_cell(h0n, hidden[1], p['w_ih1'], p['w_hh1'], p['b_ih1'], p['b_hh1'])
  out_cat = jnp.concatenate([h1n, weighted, emb], axis=1)
  pred = jnp.sum(out_cat * p['w_out'], axis=1) + p['b_out'][0, 0]
  return pred, jnp.stack([h0n, h1n], axis=0), a


def init_params(key, H):
  ks = jax.random.split(key, 16)
  n = lambda k, shp: (0.1 * jax.random.normal(k, shp)).astype(jnp.float32)
  return {
      # input_dec: Linear(output_dim=1 -> H)
      'w_indec': n(ks[0], (1, H)), 'b_indec': n(ks[1], (1, H)),
      # attention: Linear(3H -> H), v: Linear(H -> 1, no bias)
      'w_attn': n(ks[2], (3 * H, H)), 'b_attn': n(ks[3], (1, H)),
      'v_attn': n(ks[4], (1, H)),
      # GRU layer 0 (input 3H) and layer 1 (input H); gate order [r | z | n]
      'w_ih0': n(ks[5], (3 * H, 3 * H)), 'w_hh0': n(ks[6], (H, 3 * H)),
      'b_ih0': n(ks[7], (1, 3 * H)), 'b_hh0': n(ks[8], (1, 3 * H)),
      'w_ih1': n(ks[9], (H, 3 * H)), 'w_hh1': n(ks[10], (H, 3 * H)),
      'b_ih1': n(ks[11], (1, 3 * H)), 'b_hh1': n(ks[12], (1, 3 * H)),
      # out: Linear(4H -> 1)
      'w_out': n(ks[13], (1, 4 * H)), 'b_out': n(ks[14], (1, 1)),
  }


if __name__ == "__main__":
  B, H, S, L = 4, 32, 8, 2          # batch, hidden, src_len per side, dec_layers
  key = jax.random.PRNGKey(0)
  kx, kh, kd, kl, kr, kp = jax.random.split(key, 6)

  x = jax.random.normal(kx, (B,), dtype=jnp.float32)                  # prev output
  hidden = jax.random.normal(kh, (L, B, H), dtype=jnp.float32)        # GRU hidden
  hidden_decoder = jax.random.normal(kd, (B, H), dtype=jnp.float32)   # attn query
  enc_left = jax.random.normal(kl, (S, B, 2 * H), dtype=jnp.float32)
  enc_right = jax.random.normal(kr, (S, B, 2 * H), dtype=jnp.float32)
  params = init_params(kp, H)

  pred, hid_new, attn = decoder_forward(x, hidden, hidden_decoder,
                                        enc_left, enc_right, params)
  jax.block_until_ready((pred, hid_new, attn))

  pred_r, hid_r, attn_r = reference_forward(x, hidden, hidden_decoder,
                                            enc_left, enc_right, params)
  # Both use bf16 MXU operands with f32 accumulation; the kernel's softmax is
  # fully f32 (per-batch max, exact reciprocal) -> diffs are dominated by the
  # reference's own bf16 rounding, well inside 5e-3.
  np.testing.assert_allclose(np.asarray(pred), np.asarray(pred_r), atol=5e-3, rtol=5e-3)
  np.testing.assert_allclose(np.asarray(hid_new), np.asarray(hid_r), atol=5e-3, rtol=5e-3)
  np.testing.assert_allclose(np.asarray(attn), np.asarray(attn_r), atol=5e-3, rtol=5e-3)

  assert pred.shape == (B,) and hid_new.shape == (L, B, H) and attn.shape == (B, 2 * S)
  print("KERNEL_OK")
</pallas_src>

<mosaic_0001>
module attributes {stable_mosaic.version = 11 : i64} {
  func.func @_decoder_kernel(%arg0: memref<4x1xf32, #tpu.memory_space<vmem>>, %arg1: memref<4x32xbf16, #tpu.memory_space<vmem>>, %arg2: memref<4x32xf32, #tpu.memory_space<vmem>>, %arg3: memref<4x32xf32, #tpu.memory_space<vmem>>, %arg4: memref<64x64xbf16, #tpu.memory_space<vmem>>, %arg5: memref<96x32xbf16, #tpu.memory_space<vmem>>, %arg6: memref<192x96xbf16, #tpu.memory_space<vmem>>, %arg7: memref<4x1x96xf32, #tpu.memory_space<vmem>>, %arg8: memref<5x1x32xf32, #tpu.memory_space<vmem>>, %arg9: memref<1x128xf32, #tpu.memory_space<vmem>>, %arg10: memref<4x1xf32, #tpu.memory_space<vmem>>, %arg11: memref<4x32xf32, #tpu.memory_space<vmem>>, %arg12: memref<4x32xf32, #tpu.memory_space<vmem>>, %arg13: memref<64x1xf32, #tpu.memory_space<vmem>>) attributes {dimension_semantics = [], scalar_prefetch = 0 : i64, scratch_operands = 0 : i64, tpu.core_type = #tpu.core_type<tc>} {
    %c0 = arith.constant 0 : index
    %c0_0 = arith.constant 0 : index
    %0 = vector.load %arg0[%c0, %c0_0] : memref<4x1xf32, #tpu.memory_space<vmem>>, vector<4x1xf32>
    %c0_1 = arith.constant 0 : index
    %c0_2 = arith.constant 0 : index
    %1 = vector.load %arg1[%c0_1, %c0_2] : memref<4x32xbf16, #tpu.memory_space<vmem>>, vector<4x32xbf16>
    %c0_3 = arith.constant 0 : index
    %c0_4 = arith.constant 0 : index
    %2 = vector.load %arg2[%c0_3, %c0_4] : memref<4x32xf32, #tpu.memory_space<vmem>>, vector<4x32xf32>
    %c0_5 = arith.constant 0 : index
    %c0_6 = arith.constant 0 : index
    %3 = vector.load %arg3[%c0_5, %c0_6] : memref<4x32xf32, #tpu.memory_space<vmem>>, vector<4x32xf32>
    %c0_7 = arith.constant 0 : index
    %c0_8 = arith.constant 0 : index
    %4 = vector.load %arg4[%c0_7, %c0_8] : memref<64x64xbf16, #tpu.memory_space<vmem>>, vector<64x64xbf16>
    %5 = arith.extf %4 : vector<64x64xbf16> to vector<64x64xf32>
    %c0_9 = arith.constant 0 : index
    %c0_10 = arith.constant 0 : index
    %c0_11 = arith.constant 0 : index
    %6 = vector.load %arg8[%c0_9, %c0_10, %c0_11] : memref<5x1x32xf32, #tpu.memory_space<vmem>>, vector<1x1x32xf32>
    %7 = vector.shape_cast %6 : vector<1x1x32xf32> to vector<1x32xf32>
    %c1 = arith.constant 1 : index
    %c0_12 = arith.constant 0 : index
    %c0_13 = arith.constant 0 : index
    %8 = vector.load %arg8[%c1, %c0_12, %c0_13] : memref<5x1x32xf32, #tpu.memory_space<vmem>>, vector<1x1x32xf32>
    %9 = vector.shape_cast %8 : vector<1x1x32xf32> to vector<1x32xf32>
    %c2 = arith.constant 2 : index
    %c0_14 = arith.constant 0 : index
    %c0_15 = arith.constant 0 : index
    %10 = vector.load %arg8[%c2, %c0_14, %c0_15] : memref<5x1x32xf32, #tpu.memory_space<vmem>>, vector<1x1x32xf32>
    %11 = vector.shape_cast %10 : vector<1x1x32xf32> to vector<1x32xf32>
    %c3 = arith.constant 3 : index
    %c0_16 = arith.constant 0 : index
    %c0_17 = arith.constant 0 : index
    %12 = vector.load %arg8[%c3, %c0_16, %c0_17] : memref<5x1x32xf32, #tpu.memory_space<vmem>>, vector<1x1x32xf32>
    %13 = vector.shape_cast %12 : vector<1x1x32xf32> to vector<1x32xf32>
    %c4 = arith.constant 4 : index
    %c0_18 = arith.constant 0 : index
    %c0_19 = arith.constant 0 : index
    %14 = vector.load %arg8[%c4, %c0_18, %c0_19] : memref<5x1x32xf32, #tpu.memory_space<vmem>>, vector<1x1x32xf32>
    %15 = vector.shape_cast %14 : vector<1x1x32xf32> to vector<1x32xf32>
    %16 = vector.extract_strided_slice %15 {offsets = [0, 0], sizes = [1, 1], strides = [1, 1]} : vector<1x32xf32> to vector<1x1xf32>
    %c0_20 = arith.constant 0 : index
    %c0_21 = arith.constant 0 : index
    %17 = vector.load %arg9[%c0_20, %c0_21] : memref<1x128xf32, #tpu.memory_space<vmem>>, vector<1x128xf32>
    %18 = vector.broadcast %0 : vector<4x1xf32> to vector<4x32xf32>
    %19 = vector.broadcast %7 : vector<1x32xf32> to vector<4x32xf32>
    %20 = arith.mulf %18, %19 : vector<4x32xf32>
    %21 = vector.broadcast %9 : vector<1x32xf32> to vector<4x32xf32>
    %22 = arith.addf %20, %21 : vector<4x32xf32>
    %23 = math.tanh %22 : vector<4x32xf32>
    %24 = tpu.iota {dimensions = array<i32: 0>} : vector<64x4xi32>
    %25 = tpu.iota {dimensions = array<i32: 1>} : vector<64x4xi32>
    %c16_i32 = arith.constant 16 : i32
    %26 = vector.broadcast %c16_i32 : i32 to vector<64x4xi32>
    %27 = arith.muli %25, %26 : vector<64x4xi32>
    %28 = arith.cmpi sge, %24, %27 : vector<64x4xi32>
    %c1_i32 = arith.constant 1 : i32
    %29 = vector.broadcast %c1_i32 : i32 to vector<64x4xi32>
    %30 = arith.addi %25, %29 : vector<64x4xi32>
    %c16_i32_22 = arith.constant 16 : i32
    %31 = vector.broadcast %c16_i32_22 : i32 to vector<64x4xi32>
    %32 = arith.muli %30, %31 : vector<64x4xi32>
    %33 = arith.cmpi slt, %24, %32 : vector<64x4xi32>
    %34 = arith.andi %28, %33 : vector<64x4xi1>
    %35 = arith.extui %34 : vector<64x4xi1> to vector<64x4xi32>
    %36 = arith.sitofp %35 : vector<64x4xi32> to vector<64x4xf32>
    %37 = tpu.iota {dimensions = array<i32: 0>} : vector<4x64xi32>
    %38 = tpu.iota {dimensions = array<i32: 1>} : vector<4x64xi32>
    %c16_i32_23 = arith.constant 16 : i32
    %39 = vector.broadcast %c16_i32_23 : i32 to vector<4x64xi32>
    %40 = arith.muli %37, %39 : vector<4x64xi32>
    %41 = arith.cmpi sge, %38, %40 : vector<4x64xi32>
    %c1_i32_24 = arith.constant 1 : i32
    %42 = vector.broadcast %c1_i32_24 : i32 to vector<4x64xi32>
    %43 = arith.addi %37, %42 : vector<4x64xi32>
    %c16_i32_25 = arith.constant 16 : i32
    %44 = vector.broadcast %c16_i32_25 : i32 to vector<4x64xi32>
    %45 = arith.muli %43, %44 : vector<4x64xi32>
    %46 = arith.cmpi slt, %38, %45 : vector<4x64xi32>
    %47 = arith.andi %41, %46 : vector<4x64xi1>
    %48 = arith.extui %47 : vector<4x64xi1> to vector<4x64xi32>
    %49 = arith.sitofp %48 : vector<4x64xi32> to vector<4x64xf32>
    %c0_26 = arith.constant 0 : index
    %c0_27 = arith.constant 0 : index
    %50 = vector.load %arg5[%c0_26, %c0_27] : memref<96x32xbf16, #tpu.memory_space<vmem>>, vector<32x32xbf16>
    %cst = arith.constant dense<0.000000e+00> : vector<4x32xf32>
    %51 = tpu.matmul %1, %50, %cst {dimension_numbers = #tpu.dot_dimension_numbers<[1], [0], [0], [1], [0, 0, 1, 1], [], []>} : vector<4x32xbf16>, vector<32x32xbf16>, vector<4x32xf32> -> vector<4x32xf32>
    %52 = vector.broadcast %11 : vector<1x32xf32> to vector<4x32xf32>
    %53 = arith.addf %51, %52 : vector<4x32xf32>
    %c32 = arith.constant 32 : index
    %c0_28 = arith.constant 0 : index
    %54 = vector.load %arg5[%c32, %c0_28] : memref<96x32xbf16, #tpu.memory_space<vmem>>, vector<64x32xbf16>
    %cst_29 = arith.constant dense<0.000000e+00> : vector<64x32xf32>
    %55 = tpu.matmul %4, %54, %cst_29 {dimension_numbers = #tpu.dot_dimension_numbers<[1], [0], [0], [1], [0, 0, 1, 1], [], []>} : vector<64x64xbf16>, vector<64x32xbf16>, vector<64x32xf32> -> vector<64x32xf32>
    %cst_30 = arith.constant dense<0.000000e+00> : vector<64x32xf32>
    %56 = tpu.matmul %36, %53, %cst_30 {dimension_numbers = #tpu.dot_dimension_numbers<[1], [0], [0], [1], [0, 0, 1, 1], [], []>} : vector<64x4xf32>, vector<4x32xf32>, vector<64x32xf32> -> vector<64x32xf32>
    %57 = arith.addf %55, %56 : vector<64x32xf32>
    %58 = math.tanh %57 : vector<64x32xf32>
    %59 = vector.broadcast %13 : vector<1x32xf32> to vector<64x32xf32>
    %60 = arith.mulf %58, %59 : vector<64x32xf32>
    %cst_31 = arith.constant dense<0.000000e+00> : vector<64xf32>
    %61 = vector.multi_reduction <add>, %60, %cst_31 [1] : vector<64x32xf32> to vector<64xf32>
    %62 = vector.shape_cast %61 : vector<64xf32> to vector<64x1xf32>
    %cst_32 = arith.constant -1.000000e+30 : f32
    %63 = vector.shape_cast %62 : vector<64x1xf32> to vector<64x1xf32>
    %64 = vector.broadcast %63 : vector<64x1xf32> to vector<64x4xf32>
    %65 = vector.broadcast %cst_32 : f32 to vector<64x4xf32>
    %66 = arith.select %34, %64, %65 : vector<64x4xi1>, vector<64x4xf32>
    %cst_33 = arith.constant dense<0xFF800000> : vector<4xf32>
    %67 = vector.multi_reduction <maximumf>, %66, %cst_33 [0] : vector<64x4xf32> to vector<4xf32>
    %68 = vector.shape_cast %67 : vector<4xf32> to vector<1x4xf32>
    %69 = vector.broadcast %68 : vector<1x4xf32> to vector<64x4xf32>
    %70 = arith.mulf %36, %69 : vector<64x4xf32>
    %cst_34 = arith.constant dense<0.000000e+00> : vector<64xf32>
    %71 = vector.multi_reduction <add>, %70, %cst_34 [1] : vector<64x4xf32> to vector<64xf32>
    %72 = vector.shape_cast %71 : vector<64xf32> to vector<64x1xf32>
    %73 = arith.subf %62, %72 : vector<64x1xf32>
    %74 = math.exp %73 : vector<64x1xf32>
    %75 = vector.broadcast %74 : vector<64x1xf32> to vector<64x4xf32>
    %76 = arith.mulf %36, %75 : vector<64x4xf32>
    %cst_35 = arith.constant dense<0.000000e+00> : vector<4xf32>
    %77 = vector.multi_reduction <add>, %76, %cst_35 [0] : vector<64x4xf32> to vector<4xf32>
    %78 = vector.shape_cast %77 : vector<4xf32> to vector<1x4xf32>
    %cst_36 = arith.constant 1.000000e+00 : f32
    %79 = vector.broadcast %cst_36 : f32 to vector<1x4xf32>
    %80 = arith.divf %79, %78 : vector<1x4xf32>
    %81 = vector.broadcast %80 : vector<1x4xf32> to vector<64x4xf32>
    %82 = arith.mulf %36, %81 : vector<64x4xf32>
    %cst_37 = arith.constant dense<0.000000e+00> : vector<64xf32>
    %83 = vector.multi_reduction <add>, %82, %cst_37 [1] : vector<64x4xf32> to vector<64xf32>
    %84 = vector.shape_cast %83 : vector<64xf32> to vector<64x1xf32>
    %85 = arith.mulf %74, %84 : vector<64x1xf32>
    %86 = arith.truncf %85 : vector<64x1xf32> to vector<64x1xbf16>
    %87 = arith.extf %86 : vector<64x1xbf16> to vector<64x1xf32>
    %88 = vector.broadcast %87 : vector<64x1xf32> to vector<64x64xf32>
    %89 = arith.mulf %88, %5 : vector<64x64xf32>
    %cst_38 = arith.constant dense<0.000000e+00> : vector<4x64xf32>
    %90 = tpu.matmul %49, %89, %cst_38 {dimension_numbers = #tpu.dot_dimension_numbers<[1], [0], [0], [1], [0, 0, 1, 1], [], []>} : vector<4x64xf32>, vector<64x64xf32>, vector<4x64xf32> -> vector<4x64xf32>
    %91 = arith.truncf %23 : vector<4x32xf32> to vector<4x32xbf16>
    %92 = arith.truncf %90 : vector<4x64xf32> to vector<4x64xbf16>
    %93 = arith.truncf %2 : vector<4x32xf32> to vector<4x32xbf16>
    %94 = arith.truncf %3 : vector<4x32xf32> to vector<4x32xbf16>
    %c0_39 = arith.constant 0 : index
    %c0_40 = arith.constant 0 : index
    %95 = vector.load %arg6[%c0_39, %c0_40] : memref<192x96xbf16, #tpu.memory_space<vmem>>, vector<32x96xbf16>
    %cst_41 = arith.constant dense<0.000000e+00> : vector<4x96xf32>
    %96 = tpu.matmul %91, %95, %cst_41 {dimension_numbers = #tpu.dot_dimension_numbers<[1], [0], [0], [1], [0, 0, 1, 1], [], []>} : vector<4x32xbf16>, vector<32x96xbf16>, vector<4x96xf32> -> vector<4x96xf32>
    %c32_42 = arith.constant 32 : index
    %c0_43 = arith.constant 0 : index
    %97 = vector.load %arg6[%c32_42, %c0_43] : memref<192x96xbf16, #tpu.memory_space<vmem>>, vector<64x96xbf16>
    %cst_44 = arith.constant dense<0.000000e+00> : vector<4x96xf32>
    %98 = tpu.matmul %92, %97, %cst_44 {dimension_numbers = #tpu.dot_dimension_numbers<[1], [0], [0], [1], [0, 0, 1, 1], [], []>} : vector<4x64xbf16>, vector<64x96xbf16>, vector<4x96xf32> -> vector<4x96xf32>
    %99 = arith.addf %96, %98 : vector<4x96xf32>
    %c0_45 = arith.constant 0 : index
    %c0_46 = arith.constant 0 : index
    %c0_47 = arith.constant 0 : index
    %100 = vector.load %arg7[%c0_45, %c0_46, %c0_47] : memref<4x1x96xf32, #tpu.memory_space<vmem>>, vector<1x1x96xf32>
    %101 = vector.shape_cast %100 : vector<1x1x96xf32> to vector<1x96xf32>
    %102 = vector.broadcast %101 : vector<1x96xf32> to vector<4x96xf32>
    %103 = arith.addf %99, %102 : vector<4x96xf32>
    %c96 = arith.constant 96 : index
    %c0_48 = arith.constant 0 : index
    %104 = vector.load %arg6[%c96, %c0_48] : memref<192x96xbf16, #tpu.memory_space<vmem>>, vector<32x96xbf16>
    %cst_49 = arith.constant dense<0.000000e+00> : vector<4x96xf32>
    %105 = tpu.matmul %93, %104, %cst_49 {dimension_numbers = #tpu.dot_dimension_numbers<[1], [0], [0], [1], [0, 0, 1, 1], [], []>} : vector<4x32xbf16>, vector<32x96xbf16>, vector<4x96xf32> -> vector<4x96xf32>
    %c1_50 = arith.constant 1 : index
    %c0_51 = arith.constant 0 : index
    %c0_52 = arith.constant 0 : index
    %106 = vector.load %arg7[%c1_50, %c0_51, %c0_52] : memref<4x1x96xf32, #tpu.memory_space<vmem>>, vector<1x1x96xf32>
    %107 = vector.shape_cast %106 : vector<1x1x96xf32> to vector<1x96xf32>
    %108 = vector.broadcast %107 : vector<1x96xf32> to vector<4x96xf32>
    %109 = arith.addf %105, %108 : vector<4x96xf32>
    %110 = vector.extract_strided_slice %103 {offsets = [0, 0], sizes = [4, 32], strides = [1, 1]} : vector<4x96xf32> to vector<4x32xf32>
    %111 = vector.extract_strided_slice %109 {offsets = [0, 0], sizes = [4, 32], strides = [1, 1]} : vector<4x96xf32> to vector<4x32xf32>
    %112 = arith.addf %110, %111 : vector<4x32xf32>
    %113 = arith.negf %112 : vector<4x32xf32>
    %114 = math.exp %113 : vector<4x32xf32>
    %cst_53 = arith.constant 1.000000e+00 : f32
    %115 = vector.broadcast %cst_53 : f32 to vector<4x32xf32>
    %116 = arith.addf %115, %114 : vector<4x32xf32>
    %117 = arith.divf %115, %116 : vector<4x32xf32>
    %118 = vector.extract_strided_slice %103 {offsets = [0, 32], sizes = [4, 32], strides = [1, 1]} : vector<4x96xf32> to vector<4x32xf32>
    %119 = vector.extract_strided_slice %109 {offsets = [0, 32], sizes = [4, 32], strides = [1, 1]} : vector<4x96xf32> to vector<4x32xf32>
    %120 = arith.addf %118, %119 : vector<4x32xf32>
    %121 = arith.negf %120 : vector<4x32xf32>
    %122 = math.exp %121 : vector<4x32xf32>
    %cst_54 = arith.constant 1.000000e+00 : f32
    %123 = vector.broadcast %cst_54 : f32 to vector<4x32xf32>
    %124 = arith.addf %123, %122 : vector<4x32xf32>
    %125 = arith.divf %123, %124 : vector<4x32xf32>
    %126 = vector.extract_strided_slice %103 {offsets = [0, 64], sizes = [4, 32], strides = [1, 1]} : vector<4x96xf32> to vector<4x32xf32>
    %127 = vector.extract_strided_slice %109 {offsets = [0, 64], sizes = [4, 32], strides = [1, 1]} : vector<4x96xf32> to vector<4x32xf32>
    %128 = arith.mulf %117, %127 : vector<4x32xf32>
    %129 = arith.addf %126, %128 : vector<4x32xf32>
    %130 = math.tanh %129 : vector<4x32xf32>
    %cst_55 = arith.constant 1.000000e+00 : f32
    %131 = vector.broadcast %cst_55 : f32 to vector<4x32xf32>
    %132 = arith.subf %131, %125 : vector<4x32xf32>
    %133 = arith.mulf %132, %130 : vector<4x32xf32>
    %134 = arith.mulf %125, %2 : vector<4x32xf32>
    %135 = arith.addf %133, %134 : vector<4x32xf32>
    %136 = arith.truncf %135 : vector<4x32xf32> to vector<4x32xbf16>
    %c128 = arith.constant 128 : index
    %c0_56 = arith.constant 0 : index
    %137 = vector.load %arg6[%c128, %c0_56] : memref<192x96xbf16, #tpu.memory_space<vmem>>, vector<32x96xbf16>
    %cst_57 = arith.constant dense<0.000000e+00> : vector<4x96xf32>
    %138 = tpu.matmul %136, %137, %cst_57 {dimension_numbers = #tpu.dot_dimension_numbers<[1], [0], [0], [1], [0, 0, 1, 1], [], []>} : vector<4x32xbf16>, vector<32x96xbf16>, vector<4x96xf32> -> vector<4x96xf32>
    %c2_58 = arith.constant 2 : index
    %c0_59 = arith.constant 0 : index
    %c0_60 = arith.constant 0 : index
    %139 = vector.load %arg7[%c2_58, %c0_59, %c0_60] : memref<4x1x96xf32, #tpu.memory_space<vmem>>, vector<1x1x96xf32>
    %140 = vector.shape_cast %139 : vector<1x1x96xf32> to vector<1x96xf32>
    %141 = vector.broadcast %140 : vector<1x96xf32> to vector<4x96xf32>
    %142 = arith.addf %138, %141 : vector<4x96xf32>
    %c160 = arith.constant 160 : index
    %c0_61 = arith.constant 0 : index
    %143 = vector.load %arg6[%c160, %c0_61] : memref<192x96xbf16, #tpu.memory_space<vmem>>, vector<32x96xbf16>
    %cst_62 = arith.constant dense<0.000000e+00> : vector<4x96xf32>
    %144 = tpu.matmul %94, %143, %cst_62 {dimension_numbers = #tpu.dot_dimension_numbers<[1], [0], [0], [1], [0, 0, 1, 1], [], []>} : vector<4x32xbf16>, vector<32x96xbf16>, vector<4x96xf32> -> vector<4x96xf32>
    %c3_63 = arith.constant 3 : index
    %c0_64 = arith.constant 0 : index
    %c0_65 = arith.constant 0 : index
    %145 = vector.load %arg7[%c3_63, %c0_64, %c0_65] : memref<4x1x96xf32, #tpu.memory_space<vmem>>, vector<1x1x96xf32>
    %146 = vector.shape_cast %145 : vector<1x1x96xf32> to vector<1x96xf32>
    %147 = vector.broadcast %146 : vector<1x96xf32> to vector<4x96xf32>
    %148 = arith.addf %144, %147 : vector<4x96xf32>
    %149 = vector.extract_strided_slice %142 {offsets = [0, 0], sizes = [4, 32], strides = [1, 1]} : vector<4x96xf32> to vector<4x32xf32>
    %150 = vector.extract_strided_slice %148 {offsets = [0, 0], sizes = [4, 32], strides = [1, 1]} : vector<4x96xf32> to vector<4x32xf32>
    %151 = arith.addf %149, %150 : vector<4x32xf32>
    %152 = arith.negf %151 : vector<4x32xf32>
    %153 = math.exp %152 : vector<4x32xf32>
    %cst_66 = arith.constant 1.000000e+00 : f32
    %154 = vector.broadcast %cst_66 : f32 to vector<4x32xf32>
    %155 = arith.addf %154, %153 : vector<4x32xf32>
    %156 = arith.divf %154, %155 : vector<4x32xf32>
    %157 = vector.extract_strided_slice %142 {offsets = [0, 32], sizes = [4, 32], strides = [1, 1]} : vector<4x96xf32> to vector<4x32xf32>
    %158 = vector.extract_strided_slice %148 {offsets = [0, 32], sizes = [4, 32], strides = [1, 1]} : vector<4x96xf32> to vector<4x32xf32>
    %159 = arith.addf %157, %158 : vector<4x32xf32>
    %160 = arith.negf %159 : vector<4x32xf32>
    %161 = math.exp %160 : vector<4x32xf32>
    %cst_67 = arith.constant 1.000000e+00 : f32
    %162 = vector.broadcast %cst_67 : f32 to vector<4x32xf32>
    %163 = arith.addf %162, %161 : vector<4x32xf32>
    %164 = arith.divf %162, %163 : vector<4x32xf32>
    %165 = vector.extract_strided_slice %142 {offsets = [0, 64], sizes = [4, 32], strides = [1, 1]} : vector<4x96xf32> to vector<4x32xf32>
    %166 = vector.extract_strided_slice %148 {offsets = [0, 64], sizes = [4, 32], strides = [1, 1]} : vector<4x96xf32> to vector<4x32xf32>
    %167 = arith.mulf %156, %166 : vector<4x32xf32>
    %168 = arith.addf %165, %167 : vector<4x32xf32>
    %169 = math.tanh %168 : vector<4x32xf32>
    %cst_68 = arith.constant 1.000000e+00 : f32
    %170 = vector.broadcast %cst_68 : f32 to vector<4x32xf32>
    %171 = arith.subf %170, %164 : vector<4x32xf32>
    %172 = arith.mulf %171, %169 : vector<4x32xf32>
    %173 = arith.mulf %164, %3 : vector<4x32xf32>
    %174 = arith.addf %172, %173 : vector<4x32xf32>
    %175 = vector.extract_strided_slice %17 {offsets = [0, 0], sizes = [1, 32], strides = [1, 1]} : vector<1x128xf32> to vector<1x32xf32>
    %176 = vector.broadcast %175 : vector<1x32xf32> to vector<4x32xf32>
    %177 = arith.mulf %174, %176 : vector<4x32xf32>
    %cst_69 = arith.constant dense<0.000000e+00> : vector<4xf32>
    %178 = vector.multi_reduction <add>, %177, %cst_69 [1] : vector<4x32xf32> to vector<4xf32>
    %179 = vector.shape_cast %178 : vector<4xf32> to vector<4x1xf32>
    %180 = vector.extract_strided_slice %17 {offsets = [0, 32], sizes = [1, 64], strides = [1, 1]} : vector<1x128xf32> to vector<1x64xf32>
    %181 = vector.broadcast %180 : vector<1x64xf32> to vector<4x64xf32>
    %182 = arith.mulf %90, %181 : vector<4x64xf32>
    %cst_70 = arith.constant dense<0.000000e+00> : vector<4xf32>
    %183 = vector.multi_reduction <add>, %182, %cst_70 [1] : vector<4x64xf32> to vector<4xf32>
    %184 = vector.shape_cast %183 : vector<4xf32> to vector<4x1xf32>
    %185 = arith.addf %179, %184 : vector<4x1xf32>
    %186 = vector.extract_strided_slice %17 {offsets = [0, 96], sizes = [1, 32], strides = [1, 1]} : vector<1x128xf32> to vector<1x32xf32>
    %187 = vector.broadcast %186 : vector<1x32xf32> to vector<4x32xf32>
    %188 = arith.mulf %23, %187 : vector<4x32xf32>
    %cst_71 = arith.constant dense<0.000000e+00> : vector<4xf32>
    %189 = vector.multi_reduction <add>, %188, %cst_71 [1] : vector<4x32xf32> to vector<4xf32>
    %190 = vector.shape_cast %189 : vector<4xf32> to vector<4x1xf32>
    %191 = arith.addf %185, %190 : vector<4x1xf32>
    %192 = vector.broadcast %16 : vector<1x1xf32> to vector<4x1xf32>
    %193 = arith.addf %191, %192 : vector<4x1xf32>
    %c0_72 = arith.constant 0 : index
    %c0_73 = arith.constant 0 : index
    %194 = vector.load %arg10[%c0_72, %c0_73] : memref<4x1xf32, #tpu.memory_space<vmem>>, vector<4x1xf32>
    tpu.vector_store %arg10[%c0_72, %c0_73], %193 {strides = array<i32>} : memref<4x1xf32, #tpu.memory_space<vmem>>, vector<4x1xf32>,
    %c0_74 = arith.constant 0 : index
    %c0_75 = arith.constant 0 : index
    %195 = vector.load %arg11[%c0_74, %c0_75] : memref<4x32xf32, #tpu.memory_space<vmem>>, vector<4x32xf32>
    tpu.vector_store %arg11[%c0_74, %c0_75], %135 {strides = array<i32>} : memref<4x32xf32, #tpu.memory_space<vmem>>, vector<4x32xf32>,
    %c0_76 = arith.constant 0 : index
    %c0_77 = arith.constant 0 : index
    %196 = vector.load %arg12[%c0_76, %c0_77] : memref<4x32xf32, #tpu.memory_space<vmem>>, vector<4x32xf32>
    tpu.vector_store %arg12[%c0_76, %c0_77], %174 {strides = array<i32>} : memref<4x32xf32, #tpu.memory_space<vmem>>, vector<4x32xf32>,
    %c0_78 = arith.constant 0 : index
    %c0_79 = arith.constant 0 : index
    %197 = vector.load %arg13[%c0_78, %c0_79] : memref<64x1xf32, #tpu.memory_space<vmem>>, vector<64x1xf32>
    tpu.vector_store %arg13[%c0_78, %c0_79], %85 {strides = array<i32>} : memref<64x1xf32, #tpu.memory_space<vmem>>, vector<64x1xf32>,
    return
  }
}

</mosaic_0001>

<bundles_post_ra>
// kernel: tpu_custom_call.1
= control target key start
LH: loop header
LB: loop body
LE: loop exit
PB: predicated region body
PF: predicated region fallthrough
CT: control target
= control target key end

     0   :  { %19 = vsyncpa [#allocation3], 0  ;;  %s2234_s0 = inlined_call_operand.vmem [shape: f32[4,1], index: 0, kind: input, shape index: {}]   ;;  %s2235_s1 = inlined_call_operand.vmem [shape: bf16[4,32], index: 1, kind: input, shape index: {}]   ;;  %s2236_s2 = inlined_call_operand.vmem [shape: f32[4,32], index: 2, kind: input, shape index: {}]   ;;  %s2237_s3 = inlined_call_operand.vmem [shape: f32[4,32], index: 3, kind: input, shape index: {}]   ;;  %s2238_s4 = inlined_call_operand.vmem [shape: bf16[64,64], index: 4, kind: input, shape index: {}]   ;;  %s2239_s5 = inlined_call_operand.vmem [shape: bf16[96,32], index: 5, kind: input, shape index: {}]   ;;  %s2240_s6 = inlined_call_operand.hbm [shape: bf16[192,96], index: 6, kind: input, shape index: {}]   ;;  %s2241_s7 = inlined_call_operand.vmem [shape: f32[4,1,96], index: 7, kind: input, shape index: {}]   ;;  %s2242_s8 = inlined_call_operand.vmem [shape: f32[5,1,32], index: 8, kind: input, shape index: {}]   ;;  %s2243_s9 = inlined_call_operand.vmem [shape: f32[1,128], index: 9, kind: input, shape index: {}]   ;;  %s2244_s10 = inlined_call_operand.vmem [shape: f32[4,1], index: 10, kind: output, shape index: {0}]   ;;  %s2245_s11 = inlined_call_operand.hbm [shape: f32[4,32], index: 11, kind: output, shape index: {1}]   ;;  %s2246_s12 = inlined_call_operand.hbm [shape: f32[4,32], index: 12, kind: output, shape index: {2}]   ;;  %s2247_s13 = inlined_call_operand.vmem [shape: f32[64,1], index: 13, kind: output, shape index: {3}]  }
   0x1   :  { %20 = vsyncpa [#allocation4], 0 }
   0x2   :  { %21 = vsyncpa [#allocation7], 0  ;;  %s1668_s25 = smov [#allocation2]  }
   0x3   :  { %s39_s26 = sshll.u32 %s1668_s25, 4  ;;  %s40_s26 = int_to_ptr.vmem [resolvable:$true] %s39_s26 }
   0x4   :  { %s1610_s27 = scalar_lea.vmem %s40_s26, 1536  ;;  %p1615_p1 = scmp.lt.s32.totalorder %s40_s26, %s40_s26 }
   0x5   :  { %p1611_p0 = scmp.ne.s32.totalorder %s40_s26, %s1610_s27  ;;  %p1616_p2 = scmp.lt.s32.totalorder %s1610_s27, %s1610_s27 }
   0x7   :  { %p1617_p3 = por %p1616_p2, %p1615_p1 }
   0x9   :  { %p1618_p4 = pnand %p1617_p3, %p1611_p0 }
   0xb   :  { %1621 = shalt.err (!%p1618_p4)
}
   0xc   :  { %s1669_s28 = smov 64   ;;  %s1670_s29 = smov 4  }
   0xd   :  { %45 = dma.hbm_to_vmem [thread:$0]  %s2240_s6, 1536, %s40_s26, [#allocation3], %s1669_s28, %s1669_s28, %s1670_s29  }
   0xe   :  { %1662 = dma.done.wait [#allocation3], 1536  }
   0xf   :  { %1663 = vsyncadd [#allocation3], 4294965760  ;;  %v1671_v0 = vmov 0.0   ;;  %vm1672_vm0 = vmmov 0   ;;  %v1528_v1 = vld [vmem:[%s2239_s5 + $0x8] sm:$0xff]   ;;  %v1529_v2 = vld [vmem:[%s2239_s5] sm:$0xff]   ;;  %v106_v4 = vlaneseq }
  0x10   :  { %1416 = vmatprep.subr.bf16.mxu0 %v1671_v0  ;;  %1420 = vmatprep.mubr.msk.bf16.mxu0 %vm1672_vm0, %v1671_v0  ;;  %vm2248_vm1 = vcmask 261120   ;;  %v57_v3 = vld [vmem:[%s2235_s1] sm:$0x3]  ;;  %vm242_vm7 = vcmask 31744   ;;  %v1315_v26 = vld [vmem:[%s2242_s8 + $0x2] ss:$0 sm:$0xff] }
  0x11   :  { %1417 = vmatpush3.bf16.msra.mxu0 %v1528_v1  ;;  %v1770_v5 = vand.u32 127, %v106_v4  ;;  %v1773_v7 = vshrl.u32 %v106_v4, 7  ;;  %v1530_v29 = vld [vmem:[%s2239_s5 + $0x28] sm:$0xff]   ;;  %v1531_v33 = vld [vmem:[%s2239_s5 + $0x20] sm:$0xff]   ;;  %v1532_v38 = vld [vmem:[%s2239_s5 + $0x18] sm:$0xff]   ;;  %s1674_s23 = smov 32  }
  0x12   :  { %1418 = vmatprep.subr.bf16.mxu0 %v1671_v0  ;;  %v1533_v41 = vld [vmem:[%s2239_s5 + $0x10] sm:$0xff]   ;;  %v1880_v42 = vld [vmem:[%s2238_s4] sm:$0xff]   ;;  %v1894_v44 = vld [vmem:[%s2238_s4 + $0x8] sm:$0xff]   ;;  %s1675_s26 = smov 96  }
  0x13   :  { %v126_v6 = vadd.s32 1, %v1770_v5  ;;  %v117_v8 = vmul.u32 16, %v1770_v5  ;;  %v108_v10 = vadd.s32 8, %v1773_v7  ;;  %v109_v14 = vadd.s32 16, %v1773_v7  ;;  %v1899_v45 = vld [vmem:[%s2238_s4 + $0x10] sm:$0xff]   ;;  %v1913_v46 = vld [vmem:[%s2238_s4 + $0x18] sm:$0xff]  }
  0x14   :  { %v110_v15 = vadd.s32 24, %v1773_v7  ;;  %v111_v18 = vadd.s32 32, %v1773_v7  ;;  %v112_v19 = vadd.s32 40, %v1773_v7  ;;  %v113_v22 = vadd.s32 48, %v1773_v7 }
  0x15   :  { %1419 = vmatpush3.bf16.msra.mxu0 %v1529_v2  ;;  %v127_v9 = vmul.u32 16, %v126_v6  ;;  %vm118_vm2 = vcmp.ge.s32.totalorder %v1773_v7, %v117_v8  ;;  %vm119_vm5 = vcmp.ge.s32.totalorder %v108_v10, %v117_v8  ;;  %vm120_vm9 = vcmp.ge.s32.totalorder %v109_v14, %v117_v8 }
  0x16   :  { %1454 = vmatprep.subr.mxu0 %v1671_v0  ;;  %vm121_vm12 = vcmp.ge.s32.totalorder %v110_v15, %v117_v8  ;;  %vm122_vm15 = vcmp.ge.s32.totalorder %v111_v18, %v117_v8  ;;  %v114_v23 = vadd.s32 56, %v1773_v7 }
  0x17   :  { %vm128_vm3 = vcmp.lt.s32.totalorder %v1773_v7, %v127_v9  ;;  %vm129_vm6 = vcmp.lt.s32.totalorder %v108_v10, %v127_v9  ;;  %vm130_vm10 = vcmp.lt.s32.totalorder %v109_v14, %v127_v9  ;;  %vm131_vm13 = vcmp.lt.s32.totalorder %v110_v15, %v127_v9 }
  0x18   :  { %1421 = vmatmul.mubr.msk.bf16.vlgmr.msra.gmra.mxu0 %vm2248_vm1, %v57_v3  ;;  %vm1779_vm4 = vmand %vm118_vm2, %vm128_vm3  ;;  %vm132_vm2 = vcmp.lt.s32.totalorder %v111_v18, %v127_v9 }
  0x19   :  { %1470 = vmatprep.mubr.msk.f32.mxu0 %vm1672_vm0, %v1671_v0  ;;  %v1786_v12 = vsel %vm1779_vm4, 1.0, %v1671_v0  ;;  %vm1788_vm8 = vmand %vm119_vm5, %vm129_vm6  ;;  %vm123_vm5 = vcmp.ge.s32.totalorder %v112_v19, %v117_v8  ;;  %vm133_vm6 = vcmp.lt.s32.totalorder %v112_v19, %v127_v9 }
  0x1a   :  { %1426 = vmatprep.mubr.msk.f32.mxu1 %vm242_vm7, %v1786_v12  ;;  %vm1796_vm11 = vmand %vm120_vm9, %vm130_vm10  ;;  %vm124_vm10 = vcmp.ge.s32.totalorder %v113_v22, %v117_v8  ;;  %v1833_v31 = vsel %vm1788_vm8, 1.0, %v1671_v0 }
  0x1b   :  { %vm1800_vm14 = vmand %vm121_vm12, %vm131_vm13  ;;  %vm134_vm12 = vcmp.lt.s32.totalorder %v113_v22, %v127_v9  ;;  %v1838_v32 = vsel %vm1796_vm11, 1.0, %v1671_v0 }
  0x1c   :  { %vm1806_vm3 = vmand %vm122_vm15, %vm132_vm2  ;;  %vm125_vm15 = vcmp.ge.s32.totalorder %v114_v23, %v117_v8  ;;  %vm135_vm2 = vcmp.lt.s32.totalorder %v114_v23, %v127_v9  ;;  %v1850_v36 = vsel %vm1800_vm14, 1.0, %v1671_v0  ;;  %v1340_v9 = vld [vmem:[%s2242_s8 + $0x3] ss:$0 sm:$0xff] }
  0x1d   :  { %vm1810_vm9 = vmand %vm123_vm5, %vm133_vm6  ;;  %vm267_vm5 = vcmask 1043456   ;;  %v1855_v37 = vsel %vm1806_vm3, 1.0, %v1671_v0  ;;  %vm420_vm6 = vcmask 523264  }
  0x1e   :  { %vm1816_vm13 = vmand %vm124_vm10, %vm134_vm12  ;;  %v1867_v39 = vsel %vm1810_vm9, 1.0, %v1671_v0  ;;  %vm2265_vm10 = vcmask 261120  }
  0x1f   :  { %vm1820_vm1 = vmand %vm125_vm15, %vm135_vm2  ;;  %v1872_v40 = vsel %vm1816_vm13, 1.0, %v1671_v0 }
  0x20   :  { %v1889_v43 = vsel %vm1820_vm1, 1.0, %v1671_v0  ;;  %vm2266_vm12 = vmmov %vm2265_vm10 }
  0x21   :  { %vm2267_vm15 = vmmov %vm2265_vm10 }
  0x22   :  { %vm2268_vm2 = vmmov %vm2265_vm10 }
  0xd8   :  { %v228_v27 = vpop.f32.mrf.mxu0 }
  0xd9   :  { %v229_v28 = vadd.f32 %v1315_v26, %v228_v27 }
  0xda   :  { %v1422_v30 = vpop.f32.mrf.mxu0 }
  0xdb   :  { %1424 = vmatprep.subr.msk.mxu1 %vm267_vm5, %v229_v28 }
  0xdc   :  { %v231_v34 = vpop.f32.mrf.mxu0  ;;  %1425 = vmatpush3.msk.msra.mxu1 %vm267_vm5, %v229_v28  ;;  %vm2269_vm5 = vmmov %vm2268_vm2 }
  0xdd   :  { %1427 = vmatmul.mubr.msk.f32.vlgmr.msra.gmra.mxu1 %vm242_vm7, %v1833_v31  ;;  %1438 = vmatprep.subr.bf16.mxu1 %v1530_v29 }
  0xde   :  { %v1423_v35 = vpop.f32.mrf.mxu0  ;;  %1439 = vmatpush3.bf16.msra.mxu1 %v1530_v29  ;;  %1429 = vmatprep.mubr.msk.f32.mxu1 %vm242_vm7, %v1838_v32 }
  0xdf   :  { %1440 = vmatprep.subr.bf16.mxu1 %v1531_v33 }
  0xe1   :  { %1430 = vmatmul.mubr.msk.f32.gmra.mxu1 %vm242_vm7, %v1850_v36 }
  0xe2   :  { %1441 = vmatpush3.bf16.msra.mxu1 %v1531_v33  ;;  %1432 = vmatprep.mubr.msk.f32.mxu1 %vm242_vm7, %v1855_v37 }
  0xe3   :  { %1442 = vmatprep.subr.bf16.mxu1 %v1532_v38 }
  0xe5   :  { %1433 = vmatmul.mubr.msk.f32.gmra.mxu1 %vm242_vm7, %v1867_v39 }
  0xe6   :  { %1443 = vmatpush3.bf16.msra.mxu1 %v1532_v38  ;;  %1435 = vmatprep.mubr.msk.f32.mxu1 %vm242_vm7, %v1872_v40 }
  0xe7   :  { %1444 = vmatprep.subr.bf16.mxu1 %v1533_v41 }
  0xe9   :  { %1436 = vmatmul.mubr.msk.f32.gmra.mxu1 %vm242_vm7, %v1889_v43 }
  0xea   :  { %1445 = vmatpush3.bf16.msra.mxu1 %v1533_v41  ;;  %1446 = vmatprep.mubr.msk.bf16.mxu1 %vm420_vm6, %v1880_v42 }
  0xeb   :  { %1473 = vmatprep.subr.bf16.mxu1 %v1671_v0 }
  0xed   :  { %1447 = vmatmul.mubr.msk.bf16.vlgmr.msra.gmra.mxu1 %vm420_vm6, %v1894_v44 }
  0xee   :  { %1450 = vmatprep.mubr.msk.bf16.mxu1 %vm420_vm6, %v1899_v45 }
  0xf5   :  { %1451 = vmatmul.mubr.msk.bf16.gmra.mxu1 %vm420_vm6, %v1913_v46 }
  0xf6   :  { %1481 = vmatprep.mubr.msk.bf16.mxu1 %vm1672_vm0, %v1671_v0 }
 0x19d   :  { %v1428_v47 = vpop.f32.mrf.mxu1 }
 0x19f   :  { %v337_v48 = vpop.f32.mrf.mxu1 }
 0x1a1   :  { %v1431_v49 = vpop.f32.mrf.mxu1 }
 0x1a3   :  { %v347_v50 = vpop.f32.mrf.mxu1 }
 0x1a5   :  { %v1434_v51 = vpop.f32.mrf.mxu1 }
 0x1a7   :  { %v357_v52 = vpop.f32.mrf.mxu1 }
 0x1a9   :  { %v1437_v53 = vpop.f32.mrf.mxu1 }
 0x1ab   :  { %v367_v54 = vpop.f32.mrf.mxu1 }
 0x1ad   :  { %v1448_v55 = vpop.f32.mrf.mxu1 }
 0x1ae   :  { %v476_v56 = vadd.f32 %v1448_v55, %v347_v50 }
 0x1af   :  { %v467_v57 = vpop.f32.mrf.mxu1 }
 0x1b0   :  { %1554 = vtanh.f32 %v476_v56  ;;  %v468_v58 = vadd.f32 %v467_v57, %v337_v48 }
 0x1b1   :  { %v1449_v59 = vpop.f32.mrf.mxu1 }
 0x1b2   :  { %1556 = vtanh.f32 %v468_v58  ;;  %v479_v60 = vadd.f32 %v1449_v59, %v1431_v49 }
 0x1b3   :  { %v470_v61 = vpop.f32.mrf.mxu1 }
 0x1b4   :  { %1558 = vtanh.f32 %v479_v60  ;;  %v471_v62 = vadd.f32 %v1428_v47, %v470_v61 }
 0x1b5   :  { %v1452_v63 = vpop.f32.mrf.mxu1 }
 0x1b6   :  { %1560 = vtanh.f32 %v471_v62  ;;  %v492_v1 = vadd.f32 %v1452_v63, %v367_v54 }
 0x1b7   :  { %v483_v2 = vpop.f32.mrf.mxu1 }
 0x1b8   :  { %v484_v3 = vadd.f32 %v483_v2, %v357_v52  ;;  %1562 = vtanh.f32 %v492_v1 }
 0x1b9   :  { %v1453_v4 = vpop.f32.mrf.mxu1 }
 0x1ba   :  { %1564 = vtanh.f32 %v484_v3  ;;  %v495_v6 = vadd.f32 %v1453_v4, %v1437_v53 }
 0x1bb   :  { %v486_v8 = vpop.f32.mrf.mxu1 }
 0x1bc   :  { %v487_v10 = vadd.f32 %v1434_v51, %v486_v8  ;;  %1566 = vtanh.f32 %v495_v6 }
 0x1bd   :  { %v1555_v14 = vpop.eup %1554 }
 0x1be   :  { %1568 = vtanh.f32 %v487_v10  ;;  %v514_v15 = vmul.f32 %v1555_v14, %v1340_v9 }
 0x1bf   :  { %v1557_v18 = vpop.eup %1556 }
 0x1c0   :  { %v526_v19 = vsel %vm2265_vm10, %v514_v15, 0.0  ;;  %v512_v22 = vmul.f32 %v1557_v18, %v1340_v9  ;;  %vm2270_vm10 = vmmov %vm2268_vm2 }
 0x1c1   :  { %v1559_v23 = vpop.eup %1558  ;;  %527 = vadd.xlane.f32.xlu1 %v526_v19 }
 0x1c2   :  { %v520_v26 = vsel %vm2266_vm12, %v512_v22, 0.0  ;;  %v515_v27 = vmul.f32 %v1559_v23, %v1340_v9  ;;  %vm2271_vm12 = vmmov %vm2268_vm2 }
 0x1c3   :  { %v1561_v28 = vpop.eup %1560  ;;  %521 = vadd.xlane.f32.xlu0 %v520_v26 }
 0x1c4   :  { %v529_v29 = vsel %vm2267_vm15, %v515_v27, 0.0  ;;  %v513_v30 = vmul.f32 %v1561_v28, %v1340_v9  ;;  %vm2272_vm15 = vmmov %vm2268_vm2 }
 0x1c5   :  { %530 = vadd.xlane.f32.xlu1 %v529_v29  ;;  %v1563_v33 = vpop.eup %1562 }
 0x1c6   :  { %v523_v34 = vsel %vm2268_vm2, %v513_v30, 0.0  ;;  %v518_v48 = vmul.f32 %v1563_v33, %v1340_v9 }
 0x1c7   :  { %v1565_v35 = vpop.eup %1564  ;;  %524 = vadd.xlane.f32.xlu0 %v523_v34 }
 0x1c8   :  { %v516_v38 = vmul.f32 %v1565_v35, %v1340_v9  ;;  %v538_v52 = vsel %vm2271_vm12, %v518_v48, 0.0 }
 0x1c9   :  { %v1567_v41 = vpop.eup %1566 }
 0x1ca   :  { %v532_v47 = vsel %vm2269_vm5, %v516_v38, 0.0  ;;  %v519_v53 = vmul.f32 %v1567_v41, %v1340_v9 }
 0x1cb   :  { %v1569_v49 = vpop.eup %1568  ;;  %533 = vadd.xlane.f32.xlu0 %v532_v47 }
 0x1cc   :  { %v517_v50 = vmul.f32 %v1569_v49, %v1340_v9  ;;  %v541_v54 = vsel %vm2272_vm15, %v519_v53, 0.0 }
 0x1ce   :  { %v535_v51 = vsel %vm2270_vm10, %v517_v50, 0.0 }
 0x1cf   :  { %536 = vadd.xlane.f32.xlu1 %v535_v51  ;;  %539 = vadd.xlane.f32.xlu0 %v538_v52 }
 0x1d3   :  { %542 = vadd.xlane.f32.xlu1 %v541_v54 }
 0x24a   :  { %v1932_v56 = vpop.xlane.xlu1 %527 }
 0x24b   :  { %v546_v13 = vsel %vm1796_vm11, %v1932_v56, -1e+30  ;;  %vm2277_vm11 = vmmov %vm2268_vm2 }
 0x24c   :  { %v1930_v55 = vpop.xlane.xlu0 %521  ;;  %v554_v11 = vsel %vm242_vm7, %v546_v13, -inf }
 0x24d   :  { %v544_v4 = vsel %vm1779_vm4, %v1930_v55, -1e+30 }
 0x24e   :  { %v1936_v58 = vpop.xlane.xlu1 %530  ;;  %v552_v10 = vsel %vm242_vm7, %v544_v4, -inf }
 0x24f   :  { %v547_v20 = vsel %vm1800_vm14, %v1936_v58, -1e+30  ;;  %vm2278_vm14 = vmmov %vm2268_vm2 }
 0x250   :  { %v1934_v57 = vpop.xlane.xlu0 %524  ;;  %v555_v17 = vsel %vm242_vm7, %v547_v20, -inf }
 0x251   :  { %v545_v60 = vsel %vm1788_vm8, %v1934_v57, -1e+30 }
 0x252   :  { %v553_v21 = vsel %vm242_vm7, %v545_v60, -inf }
 0x254   :  { %v1938_v59 = vpop.xlane.xlu0 %533 }
 0x255   :  { %v548_v63 = vsel %vm1806_vm3, %v1938_v59, -1e+30 }
 0x256   :  { %v556_v6 = vsel %vm242_vm7, %v548_v63, -inf }
 0x257   :  { %v557_v15 = vmax.f32 %v552_v10, %v556_v6 }
 0x258   :  { %v1943_v61 = vpop.xlane.xlu1 %536  ;;  %v1945_v62 = vpop.xlane.xlu0 %539 }
 0x259   :  { %v549_v1 = vsel %vm1810_vm9, %v1943_v61, -1e+30  ;;  %v550_v2 = vsel %vm1816_vm13, %v1945_v62, -1e+30  ;;  %vm1217_vm9 = vcmask 257024   ;;  %vm1225_vm13 = vcmask 519168  }
 0x25a   :  { %v558_v3 = vsel %vm242_vm7, %v549_v1, -inf  ;;  %v560_v24 = vsel %vm242_vm7, %v550_v2, -inf }
 0x25b   :  { %v559_v9 = vmax.f32 %v553_v21, %v558_v3  ;;  %v561_v18 = vmax.f32 %v554_v11, %v560_v24  ;;  %v1673_v3 = vmov 0  }
 0x25c   :  { %v1969_v8 = vpop.xlane.xlu1 %542  ;;  %1527 = vset.pattern.permute.xlu0 %v1673_v3 }
 0x25d   :  { %v551_v16 = vsel %vm1820_vm1, %v1969_v8, -1e+30  ;;  %v564_v22 = vmax.f32 %v557_v15, %v559_v9  ;;  %vm1254_vm1 = vcmask 7168  }
 0x25e   :  { %v562_v14 = vsel %vm242_vm7, %v551_v16, -inf }
 0x25f   :  { %v563_v19 = vmax.f32 %v555_v17, %v562_v14 }
 0x261   :  { %v565_v23 = vmax.f32 %v561_v18, %v563_v19 }
 0x263   :  { %v566_v26 = vmax.f32 %v564_v22, %v565_v23 }
 0x265   :  { %v567_v27 = vrot.slane %v566_v26, 4 }
 0x267   :  { %v568_v28 = vmax.f32 %v566_v26, %v567_v27 }
 0x269   :  { %v569_v29 = vrot.slane %v568_v28, 2 }
 0x26b   :  { %v570_v30 = vmax.f32 %v568_v28, %v569_v29 }
 0x26d   :  { %v571_v25 = vrot.slane %v570_v30, 1 }
 0x26f   :  { %v572_v33 = vmax.f32 %v570_v30, %v571_v25 }
 0x271   :  { %v574_v34 = vmul.f32 %v1833_v31, %v572_v33  ;;  %v573_v35 = vmul.f32 %v1786_v12, %v572_v33  ;;  %v576_v47 = vmul.f32 %v1850_v36, %v572_v33  ;;  %v575_v48 = vmul.f32 %v1838_v32, %v572_v33 }
 0x272   :  { %v578_v51 = vmul.f32 %v1867_v39, %v572_v33  ;;  %v577_v52 = vmul.f32 %v1855_v37, %v572_v33  ;;  %v580_v60 = vmul.f32 %v1889_v43, %v572_v33  ;;  %v579_v63 = vmul.f32 %v1872_v40, %v572_v33 }
 0x273   :  { %v584_v38 = vsel %vm242_vm7, %v574_v34, 0.0  ;;  %v581_v41 = vsel %vm242_vm7, %v573_v35, 0.0  ;;  %v590_v49 = vsel %vm242_vm7, %v576_v47, 0.0  ;;  %v587_v50 = vsel %vm242_vm7, %v575_v48, 0.0 }
 0x274   :  { %585 = vadd.xlane.f32.xlu1 %v584_v38  ;;  %582 = vadd.xlane.f32.xlu0 %v581_v41  ;;  %v596_v53 = vsel %vm242_vm7, %v578_v51, 0.0  ;;  %v593_v54 = vsel %vm242_vm7, %v577_v52, 0.0  ;;  %v602_v1 = vsel %vm242_vm7, %v580_v60, 0.0  ;;  %v599_v2 = vsel %vm242_vm7, %v579_v63, 0.0 }
 0x278   :  { %591 = vadd.xlane.f32.xlu1 %v590_v49  ;;  %588 = vadd.xlane.f32.xlu0 %v587_v50 }
 0x27c   :  { %597 = vadd.xlane.f32.xlu1 %v596_v53  ;;  %594 = vadd.xlane.f32.xlu0 %v593_v54 }
 0x280   :  { %603 = vadd.xlane.f32.xlu1 %v602_v1  ;;  %600 = vadd.xlane.f32.xlu0 %v599_v2 }
 0x2fd   :  { %v586_v13 = vpop.xlane.xlu1 %585  ;;  %v583_v4 = vpop.xlane.xlu0 %582 }
 0x2fe   :  { %v606_v20 = vsub.f32 %v1934_v57, %v586_v13  ;;  %v605_v21 = vsub.f32 %v1930_v55, %v583_v4 }
 0x300   :  { %v615_v6 = vmul.f32 1.442695, %v606_v20  ;;  %v613_v24 = vmul.f32 1.442695, %v605_v21 }
 0x301   :  { %v592_v9 = vpop.xlane.xlu1 %591  ;;  %v589_v16 = vpop.xlane.xlu0 %588 }
 0x302   :  { %1570 = vpow2.f32 %v615_v6  ;;  %v608_v11 = vsub.f32 %v1936_v58, %v592_v9  ;;  %v607_v10 = vsub.f32 %v1932_v56, %v589_v16 }
 0x303   :  { %1572 = vpow2.f32 %v613_v24 }
 0x304   :  { %v619_v17 = vmul.f32 1.442695, %v608_v11  ;;  %v617_v14 = vmul.f32 1.442695, %v607_v10 }
 0x305   :  { %v598_v15 = vpop.xlane.xlu1 %597  ;;  %v595_v18 = vpop.xlane.xlu0 %594 }
 0x306   :  { %1574 = vpow2.f32 %v619_v17  ;;  %v610_v19 = vsub.f32 %v1943_v61, %v598_v15  ;;  %v609_v57 = vsub.f32 %v1938_v59, %v595_v18 }
 0x307   :  { %1576 = vpow2.f32 %v617_v14 }
 0x308   :  { %v623_v55 = vmul.f32 1.442695, %v610_v19  ;;  %v621_v22 = vmul.f32 1.442695, %v609_v57 }
 0x309   :  { %v604_v23 = vpop.xlane.xlu1 %603  ;;  %v601_v26 = vpop.xlane.xlu0 %600 }
 0x30a   :  { %1578 = vpow2.f32 %v623_v55  ;;  %v612_v58 = vsub.f32 %v1969_v8, %v604_v23  ;;  %v611_v56 = vsub.f32 %v1945_v62, %v601_v26 }
 0x30b   :  { %1580 = vpow2.f32 %v621_v22 }
 0x30c   :  { %v627_v27 = vmul.f32 1.442695, %v612_v58  ;;  %v625_v28 = vmul.f32 1.442695, %v611_v56 }
 0x30e   :  { %1582 = vpow2.f32 %v627_v27 }
 0x30f   :  { %v2002_v29 = vpop.eup %1570  ;;  %1584 = vpow2.f32 %v625_v28 }
 0x310   :  { %v2004_v61 = vpop.eup %1572  ;;  %v630_v59 = vmul.f32 %v2002_v29, %v1833_v31 }
 0x311   :  { %v629_v30 = vmul.f32 %v2004_v61, %v1786_v12 }
 0x312   :  { %v638_v8 = vsel %vm242_vm7, %v630_v59, 0.0 }
 0x313   :  { %v2010_v25 = vpop.eup %1574  ;;  %v637_v62 = vsel %vm242_vm7, %v629_v30, 0.0  ;;  %v1543_v30 = vld [vmem:[#allocation2 + $0x20] sm:$0xff]  }
 0x314   :  { %v2014_v33 = vpop.eup %1576  ;;  %v632_v34 = vmul.f32 %v2010_v25, %v1850_v36  ;;  %v639_v38 = vadd.f32 %v638_v8, %v637_v62  ;;  %v1544_v8 = vld [vmem:[#allocation2 + $0x18] sm:$0xff]  }
 0x315   :  { %v631_v35 = vmul.f32 %v2014_v33, %v1838_v32 }
 0x316   :  { %v642_v50 = vsel %vm242_vm7, %v632_v34, 0.0 }
 0x317   :  { %v2020_v41 = vpop.eup %1578  ;;  %v640_v47 = vsel %vm242_vm7, %v631_v35, 0.0 }
 0x318   :  { %v2023_v48 = vpop.eup %1580  ;;  %v641_v49 = vadd.f32 %v640_v47, %v639_v38  ;;  %v634_v51 = vmul.f32 %v2020_v41, %v1867_v39  ;;  %v75_v47 = vunpack.c.h.bf16 %v1913_v46 }
 0x319   :  { %v633_v52 = vmul.f32 %v2023_v48, %v1855_v37 }
 0x31a   :  { %v643_v53 = vadd.f32 %v642_v50, %v641_v49  ;;  %v646_v2 = vsel %vm242_vm7, %v634_v51, 0.0  ;;  %v74_v50 = vunpack.c.l.bf16 %v1913_v46  ;;  %v162_v46 = vadd.s32 1, %v1773_v7 }
 0x31b   :  { %v2030_v54 = vpop.eup %1582  ;;  %v644_v60 = vsel %vm242_vm7, %v633_v52, 0.0 }
 0x31c   :  { %v2033_v63 = vpop.eup %1584  ;;  %v645_v1 = vadd.f32 %v644_v60, %v643_v53  ;;  %v636_v3 = vmul.f32 %v2030_v54, %v1889_v43 }
 0x31d   :  { %v635_v13 = vmul.f32 %v2033_v63, %v1872_v40 }
 0x31e   :  { %v647_v4 = vadd.f32 %v646_v2, %v645_v1  ;;  %v650_v6 = vsel %vm242_vm7, %v636_v3, 0.0  ;;  %v73_v2 = vunpack.c.h.bf16 %v1899_v45 }
 0x31f   :  { %v648_v20 = vsel %vm242_vm7, %v635_v13, 0.0 }
 0x320   :  { %v649_v21 = vadd.f32 %v648_v20, %v647_v4 }
 0x322   :  { %v651_v24 = vadd.f32 %v650_v6, %v649_v21 }
 0x324   :  { %v652_v9 = vrot.slane %v651_v24, 4 }
 0x326   :  { %v653_v16 = vadd.f32 %v652_v9, %v651_v24  ;;  %v71_v9 = vunpack.c.h.bf16 %v1894_v44 }
 0x328   :  { %v654_v11 = vrot.slane %v653_v16, 2 }
 0x32a   :  { %v655_v10 = vadd.f32 %v654_v11, %v653_v16 }
 0x32c   :  { %v656_v17 = vrot.slane %v655_v10, 1 }
 0x32e   :  { %v657_v14 = vadd.f32 %v656_v17, %v655_v10  ;;  %v70_v10 = vunpack.c.l.bf16 %v1894_v44 }
 0x330   :  { %1586 = vrcp.f32 %v657_v14 }
 0x33d   :  { %v1587_v15 = vpop.eup %1586 }
 0x33e   :  { %v667_v18 = vmul.f32 %v1587_v15, %v1889_v43  ;;  %v666_v19 = vmul.f32 %v1587_v15, %v1872_v40  ;;  %v665_v22 = vmul.f32 %v1587_v15, %v1867_v39  ;;  %v664_v23 = vmul.f32 %v1587_v15, %v1855_v37 }
 0x33f   :  { %v663_v56 = vmul.f32 %v1587_v15, %v1850_v36  ;;  %v662_v43 = vmul.f32 %v1587_v15, %v1838_v32  ;;  %v661_v39 = vmul.f32 %v1587_v15, %v1833_v31  ;;  %v660_v37 = vmul.f32 %v1587_v15, %v1786_v12  ;;  %v56_v32 = vld [vmem:[%s2234_s0] sm:$0xf]  ;;  %v1542_v31 = vld [vmem:[#allocation2 + $0x28] sm:$0xff]  }
 0x340   :  { %v689_v57 = vsel %vm242_vm7, %v667_v18, 0.0  ;;  %v686_v55 = vsel %vm242_vm7, %v666_v19, 0.0  ;;  %v683_v26 = vsel %vm242_vm7, %v665_v22, 0.0  ;;  %v680_v58 = vsel %vm242_vm7, %v664_v23, 0.0  ;;  %v2064_v36 = vld [vmem:[%s2237_s3] sm:$0xf]  ;;  %1474 = vmatpush3.bf16.msra.mxu1 %v1542_v31 }
 0x341   :  { %690 = vadd.xlane.f32.xlu1 %v689_v57  ;;  %687 = vadd.xlane.f32.xlu0 %v686_v55  ;;  %v677_v40 = vsel %vm242_vm7, %v663_v56, 0.0  ;;  %v674_v27 = vsel %vm242_vm7, %v662_v43, 0.0  ;;  %v671_v28 = vsel %vm242_vm7, %v661_v39, 0.0  ;;  %v668_v59 = vsel %vm242_vm7, %v660_v37, 0.0  ;;  %v2071_v12 = vld [vmem:[%s2243_s9] ss:$0 sm:$0xff] }
 0x342   :  { %1475 = vmatprep.subr.bf16.mxu1 %v1671_v0  ;;  %v69_v55 = vunpack.c.h.bf16 %v1880_v42  ;;  %v68_v23 = vunpack.c.l.bf16 %v1880_v42  ;;  %v1305_v42 = vld [vmem:[%s2242_s8 + $0x1] ss:$0 sm:$0xff]  ;;  %v1538_v37 = vld [vmem:[#allocation2 + $0x8] sm:$0xff]   ;;  %v1540_v31 = vld [vmem:[#allocation2 + $0x38] sm:$0xff]  }
 0x344   :  { %1476 = vmatpush3.bf16.msra.mxu1 %v1543_v30 }
 0x345   :  { %684 = vadd.xlane.f32.xlu1 %v683_v26  ;;  %681 = vadd.xlane.f32.xlu0 %v680_v58 }
 0x346   :  { %1477 = vmatprep.subr.bf16.mxu1 %v1671_v0 }
 0x348   :  { %1478 = vmatpush3.bf16.msra.mxu1 %v1544_v8  ;;  %v1541_v8 = vld [vmem:[#allocation2 + $0x30] sm:$0xff]  }
 0x349   :  { %678 = vadd.xlane.f32.xlu1 %v677_v40  ;;  %675 = vadd.xlane.f32.xlu0 %v674_v27 }
 0x34a   :  { %1479 = vmatprep.subr.bf16.mxu1 %v1671_v0 }
 0x34d   :  { %672 = vadd.xlane.f32.xlu1 %v671_v28  ;;  %669 = vadd.xlane.f32.xlu0 %v668_v59  ;;  %v1539_v59 = vld [vmem:[#allocation2] sm:$0xff]  }
 0x363   :  { %88 = vperm.xlu0 %1527, %v56_v32  }
 0x367   :  { %1199 = vrot.lane.b32.xlu0 %v2064_v36, %s1674_s23 }
 0x36b   :  { %1221 = vrot.lane.b32.xlu0 %v2071_v12, %s1675_s26 }
 0x3ca   :  { %v691_v62 = vpop.xlane.xlu1 %690  ;;  %v688_v34 = vpop.xlane.xlu0 %687 }
 0x3cb   :  { %v699_v35 = vmul.f32 %v2030_v54, %v691_v62  ;;  %v698_v38 = vmul.f32 %v2033_v63, %v688_v34  ;;  %v58_v62 = vld [vmem:[%s2236_s2] sm:$0xf] }
 0x3cc   :  { %v795_v34 = vpack.c.bf16 %v58_v62, %v58_v62 }
 0x3cd   :  { %1262 = vst.msk [vmem:[%s2247_s13 + $0x38] sm:$0xff] %vm1254_vm1, %v699_v35  ;;  %v703_v49 = vpack.c.bf16 %v699_v35, %v698_v38  ;;  %1261 = vst.msk [vmem:[%s2247_s13 + $0x30] sm:$0xff] %vm1254_vm1, %v698_v38  ;;  %v1545_v35 = vld [vmem:[#allocation2 + $0x10] sm:$0xff]  }
 0x3ce   :  { %v685_v51 = vpop.xlane.xlu1 %684  ;;  %v682_v52 = vpop.xlane.xlu0 %681  ;;  %1480 = vmatpush3.bf16.msra.mxu1 %v1545_v35 }
 0x3cf   :  { %v710_v53 = vunpack.c.l.bf16 %v703_v49  ;;  %v711_v54 = vunpack.c.h.bf16 %v703_v49  ;;  %v697_v60 = vmul.f32 %v2020_v41, %v685_v51  ;;  %v696_v63 = vmul.f32 %v2023_v48, %v682_v52  ;;  %1501 = vmatprep.subr.bf16.mxu1 %v1671_v0 }
 0x3d0   :  { %v72_v41 = vunpack.c.l.bf16 %v1899_v45 }
 0x3d1   :  { %v719_v1 = vmul.f32 %v711_v54, %v75_v47  ;;  %1260 = vst.msk [vmem:[%s2247_s13 + $0x28] sm:$0xff] %vm1254_vm1, %v697_v60  ;;  %v702_v3 = vpack.c.bf16 %v697_v60, %v696_v63  ;;  %1259 = vst.msk [vmem:[%s2247_s13 + $0x20] sm:$0xff] %vm1254_vm1, %v696_v63  ;;  %v718_v13 = vmul.f32 %v710_v53, %v74_v50  ;;  %v1352_v54 = vld [vmem:[%s2241_s7 + $0x1] ss:$0 sm:$0xff] }
 0x3d2   :  { %v679_v48 = vpop.xlane.xlu1 %678  ;;  %v676_v4 = vpop.xlane.xlu0 %675 }
 0x3d3   :  { %v708_v20 = vunpack.c.l.bf16 %v702_v3  ;;  %v709_v21 = vunpack.c.h.bf16 %v702_v3  ;;  %v695_v6 = vmul.f32 %v2010_v25, %v679_v48  ;;  %v694_v24 = vmul.f32 %v2014_v33, %v676_v4  ;;  %1455 = vmatpush3.msra.mxu0 %v719_v1 }
 0x3d4   :  { %1456 = vmatprep.subr.mxu0 %v1671_v0  ;;  %v160_v25 = vmul.u32 16, %v1773_v7  ;;  %v163_v33 = vmul.u32 16, %v162_v46 }
 0x3d5   :  { %v717_v16 = vmul.f32 %v709_v21, %v73_v2  ;;  %1258 = vst.msk [vmem:[%s2247_s13 + $0x18] sm:$0xff] %vm1254_vm1, %v695_v6  ;;  %v701_v45 = vpack.c.bf16 %v695_v6, %v694_v24  ;;  %1257 = vst.msk [vmem:[%s2247_s13 + $0x10] sm:$0xff] %vm1254_vm1, %v694_v24  ;;  %1457 = vmatpush3.msra.mxu0 %v718_v13  ;;  %v716_v11 = vmul.f32 %v708_v20, %v72_v41  ;;  %v1350_v13 = vld [vmem:[%s2241_s7] ss:$0 sm:$0xff] }
 0x3d6   :  { %1458 = vmatprep.subr.mxu0 %v1671_v0  ;;  %v673_v17 = vpop.xlane.xlu1 %672  ;;  %v670_v14 = vpop.xlane.xlu0 %669  ;;  %vm2131_vm4 = vcmp.ge.s32.totalorder %v1770_v5, %v160_v25  ;;  %vm2136_vm7 = vcmp.lt.s32.totalorder %v1770_v5, %v163_v33  ;;  %v1304_v5 = vld [vmem:[%s2242_s8] ss:$0 sm:$0xff] }
 0x3d7   :  { %v706_v15 = vunpack.c.l.bf16 %v701_v45  ;;  %v707_v18 = vunpack.c.h.bf16 %v701_v45  ;;  %v693_v19 = vmul.f32 %v2002_v29, %v673_v17  ;;  %v692_v57 = vmul.f32 %v2004_v61, %v670_v14  ;;  %1459 = vmatpush3.msra.mxu0 %v717_v16  ;;  %vm165_vm8 = vmand %vm2131_vm4, %vm2136_vm7  ;;  %v1546_v17 = vld [vmem:[#allocation2 + $0x58] sm:$0xff]   ;;  %v1548_v14 = vld [vmem:[#allocation2 + $0x48] sm:$0xff]  }
 0x3d8   :  { %1460 = vmatprep.subr.mxu0 %v1671_v0  ;;  %v1314_v27 = vsel %vm165_vm8, 1.0, %v1671_v0 }
 0x3d9   :  { %v715_v7 = vmul.f32 %v707_v18, %v71_v9  ;;  %1256 = vst.msk [vmem:[%s2247_s13 + $0x8] sm:$0xff] %vm1254_vm1, %v693_v19  ;;  %v700_v44 = vpack.c.bf16 %v693_v19, %v692_v57  ;;  %1255 = vst.msk [vmem:[%s2247_s13] sm:$0xff] %vm1254_vm1, %v692_v57  ;;  %1461 = vmatpush3.msra.mxu0 %v716_v11  ;;  %v714_v22 = vmul.f32 %v706_v15, %v70_v10  ;;  %v1547_v18 = vld [vmem:[#allocation2 + $0x50] sm:$0xff]   ;;  %v1549_v19 = vld [vmem:[#allocation2 + $0x40] sm:$0xff]  }
 0x3da   :  { %1462 = vmatprep.subr.mxu0 %v1671_v0  ;;  %v796_v57 = vpack.c.bf16 %v2064_v36, %v2064_v36 }
 0x3db   :  { %v704_v26 = vunpack.c.l.bf16 %v700_v44  ;;  %v705_v58 = vunpack.c.h.bf16 %v700_v44  ;;  %1463 = vmatpush3.msra.mxu0 %v715_v7 }
 0x3dc   :  { %1464 = vmatprep.subr.mxu0 %v1671_v0 }
 0x3dd   :  { %v713_v56 = vmul.f32 %v705_v58, %v69_v55  ;;  %1465 = vmatpush3.msra.mxu0 %v714_v22  ;;  %v712_v40 = vmul.f32 %v704_v26, %v68_v23 }
 0x3de   :  { %1466 = vmatprep.subr.mxu0 %v1671_v0  ;;  %v89_v43 = vpop.permute.xlu0 %88 }
 0x3df   :  { %1467 = vmatpush3.msra.mxu0 %v713_v56  ;;  %v97_v39 = vmul.f32 %v1304_v5, %v89_v43  ;;  %v1358_v43 = vld [vmem:[%s2241_s7 + $0x2] ss:$0 sm:$0xff] }
 0x3e0   :  { %1468 = vmatprep.subr.mxu0 %v1671_v0 }
 0x3e1   :  { %1469 = vmatpush3.msra.mxu0 %v712_v40  ;;  %v104_v28 = vadd.f32 %v1305_v42, %v97_v39 }
 0x3e2   :  { %1471 = vmatmul.mubr.msk.f32.vlgmr.msra.gmra.mxu0 %vm420_vm6, %v1314_v27  ;;  %1485 = vmatprep.subr.bf16.mxu0 %v1671_v0 }
 0x3e3   :  { %1588 = vtanh.f32 %v104_v28  ;;  %1486 = vmatpush3.bf16.msra.mxu0 %v1538_v37  ;;  %1489 = vmatprep.mubr.msk.bf16.mxu0 %vm1672_vm0, %v1671_v0 }
 0x3e4   :  { %1487 = vmatprep.subr.bf16.mxu0 %v1671_v0 }
 0x3e7   :  { %1488 = vmatpush3.bf16.msra.mxu0 %v1539_v59 }
 0x3e8   :  { %1493 = vmatprep.subr.bf16.mxu0 %v1671_v0 }
 0x3f0   :  { %v2162_v32 = vpop.eup %1588 }
 0x3f1   :  { %v793_v30 = vpack.c.bf16 %v2162_v32, %v2162_v32 }
 0x3f3   :  { %1490 = vmatmul.mubr.msk.bf16.vlgmr.msra.gmra.mxu0 %vm2277_vm11, %v793_v30 }
 0x3f4   :  { %1494 = vmatpush3.bf16.msra.mxu0 %v1540_v31  ;;  %1497 = vmatprep.mubr.msk.bf16.mxu0 %vm1672_vm0, %v1671_v0 }
 0x3f5   :  { %1495 = vmatprep.subr.bf16.mxu0 %v1671_v0 }
 0x3f8   :  { %1496 = vmatpush3.bf16.msra.mxu0 %v1541_v8 }
 0x3f9   :  { %1509 = vmatprep.subr.bf16.mxu0 %v1671_v0 }
 0x3fb   :  { %1498 = vmatmul.mubr.msk.bf16.vlgmr.msra.gmra.mxu0 %vm2278_vm14, %v795_v34 }
 0x3fc   :  { %1513 = vmatprep.mubr.msk.bf16.mxu0 %vm1672_vm0, %v1671_v0  ;;  %1510 = vmatpush3.bf16.msra.mxu0 %v1546_v17 }
 0x3fd   :  { %1511 = vmatprep.subr.bf16.mxu0 %v1671_v0 }
 0x400   :  { %1512 = vmatpush3.bf16.msra.mxu0 %v1547_v18 }
 0x4a2   :  { %v2178_v38 = vpop.f32.mrf.mxu0 }
 0x4a3   :  { %v794_v47 = vpack.c.bf16 %v2178_v38, %v2178_v38 }
 0x4a4   :  { %v1472_v49 = vpop.f32.mrf.mxu0 }
 0x4a5   :  { %1482 = vmatmul.mubr.msk.bf16.vlgmr.msra.gmra.mxu1 %vm420_vm6, %v794_v47 }
 0x4a6   :  { %1505 = vmatprep.mubr.msk.bf16.mxu1 %vm1672_vm0, %v1671_v0  ;;  %1502 = vmatpush3.bf16.msra.mxu1 %v1548_v14  ;;  %vm2279_vm0 = vmmov %vm2268_vm2 }
 0x4a7   :  { %1503 = vmatprep.subr.bf16.mxu1 %v1671_v0  ;;  %1514 = vmatmul.mubr.msk.bf16.vlgmr.msra.gmra.mxu0 %vm2279_vm0, %v796_v57  ;;  %v1363_v0 = vld [vmem:[%s2241_s7 + $0x3] ss:$0 sm:$0xff]  ;;  %vm2280_vm3 = vmmov %vm2279_vm0  ;;  %s1676_s7 = smov [#allocation6]  }
 0x4aa   :  { %1504 = vmatpush3.bf16.msra.mxu1 %v1549_v19 }
 0x4b3   :  { %v925_v50 = vpop.f32.mrf.mxu0 }
 0x4b5   :  { %v1491_v51 = vpop.f32.mrf.mxu0 }
 0x4b7   :  { %v928_v52 = vpop.f32.mrf.mxu0 }
 0x4b8   :  { %v1200_v52 = vpop.permute.xlu0 %1199 }
 0x4b9   :  { %v1492_v53 = vpop.f32.mrf.mxu0 }
 0x4bb   :  { %v1000_v60 = vpop.f32.mrf.mxu0 }
 0x4bc   :  { %v1001_v63 = vadd.f32 %v1352_v54, %v1000_v60 }
 0x4bd   :  { %v1499_v1 = vpop.f32.mrf.mxu0 }
 0x4be   :  { %1014 = vrot.lane.b32.xlu1 %v1001_v63, %s1669_s28 }
 0x4bf   :  { %v1003_v2 = vpop.f32.mrf.mxu0 }
 0x4c1   :  { %v1500_v3 = vpop.f32.mrf.mxu0 }
 0x530   :  { %v1015_v45 = vpop.permute.xlu1 %1014 }
 0x565   :  { %v870_v46 = vpop.f32.mrf.mxu1 }
 0x566   :  { %v926_v41 = vadd.f32 %v925_v50, %v870_v46 }
 0x567   :  { %v1483_v48 = vpop.f32.mrf.mxu1  ;;  %v1168_v36 = vpop.f32.mrf.mxu0 }
 0x568   :  { %v938_v4 = vadd.f32 %v1350_v13, %v926_v41  ;;  %v1169_v26 = vadd.f32 %v1363_v0, %v1168_v36  ;;  %v1222_v13 = vpop.permute.xlu0 %1221 }
 0x569   :  { %v873_v20 = vpop.f32.mrf.mxu1  ;;  %v1515_v58 = vpop.f32.mrf.mxu0  ;;  %v1224_v41 = vmul.f32 %v1222_v13, %v2178_v38 }
 0x56a   :  { %v1006_v21 = vadd.f32 %v1001_v63, %v938_v4 }
 0x56b   :  { %v1484_v6 = vpop.f32.mrf.mxu1  ;;  %v1171_v5 = vpop.f32.mrf.mxu0 }
 0x56c   :  { %v1356_v24 = vmul.f32 -1.442695, %v1006_v21 }
 0x56d   :  { %v1516_v56 = vpop.f32.mrf.mxu0 }
 0x56e   :  { %1590 = vpow2.f32 %v1356_v24 }
 0x57b   :  { %v1591_v9 = vpop.eup %1590 }
 0x57c   :  { %v1010_v16 = vadd.f32 1.0, %v1591_v9 }
 0x57e   :  { %1592 = vrcp.f32 %v1010_v16 }
 0x58b   :  { %v1593_v25 = vpop.eup %1592 }
 0x58c   :  { %v1017_v33 = vmul.f32 %v1593_v25, %v1015_v45  ;;  %v1024_v7 = vsub.f32 1.0, %v1593_v25 }
 0x58e   :  { %1019 = vrot.lane.b32.xlu1 %v1017_v33, %s1669_s28 }
 0x600   :  { %v1020_v11 = vpop.permute.xlu1 %1019 }
 0x601   :  { %v1022_v10 = vadd.f32 %v1020_v11, %v938_v4 }
 0x603   :  { %1594 = vtanh.f32 %v1022_v10 }
 0x610   :  { %v1595_v15 = vpop.eup %1594 }
 0x611   :  { %1026 = vrot.lane.b32.xlu1 %v1595_v15, %s1675_s26 }
 0x615   :  { %1031 = vrot.lane.b32.xlu1 %v58_v62, %s1674_s23 }
 0x683   :  { %v1027_v55 = vpop.permute.xlu1 %1026 }
 0x684   :  { %v1029_v29 = vmul.f32 %v1027_v55, %v1024_v7 }
 0x687   :  { %v1032_v44 = vpop.permute.xlu1 %1031 }
 0x688   :  { %v1034_v61 = vmul.f32 %v1593_v25, %v1032_v44 }
 0x68a   :  { %v1035_v22 = vadd.f32 %v1034_v61, %v1029_v29 }
 0x68c   :  { %v1036_v23 = vpack.c.bf16 %v1035_v22, %v1035_v22 }
 0x68e   :  { %1050 = vrot.lane.b32.xlu1 %v1036_v23, %s1675_s26 }
 0x692   :  { %1182 = vrot.lane.b32.xlu1 %v1169_v26, %s1669_s28 }
 0x700   :  { %v1051_v42 = vpop.permute.xlu1 %1050 }
 0x701   :  { %1506 = vmatmul.mubr.msk.bf16.vlgmr.msra.gmra.mxu1 %vm2280_vm3, %v1051_v42 }
 0x704   :  { %v1183_v62 = vpop.permute.xlu1 %1182 }
 0x7c1   :  { %v1101_v40 = vpop.f32.mrf.mxu1 }
 0x7c2   :  { %v1102_v27 = vadd.f32 %v1358_v43, %v1101_v40 }
 0x7c3   :  { %v1507_v39 = vpop.f32.mrf.mxu1 }
 0x7c4   :  { %v1174_v37 = vadd.f32 %v1169_v26, %v1102_v27 }
 0x7c5   :  { %v1104_v28 = vpop.f32.mrf.mxu1 }
 0x7c6   :  { %v1367_v59 = vmul.f32 -1.442695, %v1174_v37 }
 0x7c7   :  { %v1508_v31 = vpop.f32.mrf.mxu1 }
 0x7c8   :  { %1596 = vpow2.f32 %v1367_v59 }
 0x7d5   :  { %v1597_v30 = vpop.eup %1596 }
 0x7d6   :  { %v1178_v8 = vadd.f32 1.0, %v1597_v30 }
 0x7d8   :  { %1598 = vrcp.f32 %v1178_v8 }
 0x7e5   :  { %v1599_v34 = vpop.eup %1598 }
 0x7e6   :  { %v1185_v35 = vmul.f32 %v1599_v34, %v1183_v62  ;;  %v1192_v51 = vsub.f32 1.0, %v1599_v34  ;;  %v1202_v60 = vmul.f32 %v1599_v34, %v1200_v52 }
 0x7e8   :  { %1187 = vrot.lane.b32.xlu1 %v1185_v35, %s1669_s28  ;;  %s1281_s28 = sshll.u32 %s1676_s7, 4  ;;  %s1282_s28 = int_to_ptr.vmem [resolvable:$true] %s1281_s28 }
 0x7e9   :  { %p1627_p6 = scmp.lt.s32.totalorder %s1282_s28, %s1282_s28 }
 0x85a   :  { %v1188_v47 = vpop.permute.xlu1 %1187 }
 0x85b   :  { %v1190_v49 = vadd.f32 %v1188_v47, %v1102_v27 }
 0x85d   :  { %1600 = vtanh.f32 %v1190_v49 }
 0x86a   :  { %v1601_v50 = vpop.eup %1600 }
 0x86b   :  { %1194 = vrot.lane.b32.xlu1 %v1601_v50, %s1675_s26 }
 0x86f   :  { %1209 = vrot.lane.b32.xlu1 %v2071_v12, %s1674_s23  ;;  %v1226_v12 = vsel %vm1225_vm13, %v1224_v41, 0.0  ;;  %s1622_s23 = scalar_lea.vmem %s1282_s28, 64 }
 0x870   :  { %p1623_p5 = scmp.ne.s32.totalorder %s1282_s28, %s1622_s23  ;;  %p1628_p7 = scmp.lt.s32.totalorder %s1622_s23, %s1622_s23 }
 0x872   :  { %p1629_p8 = por %p1628_p7, %p1627_p6 }
 0x874   :  { %p1630_p9 = pnand %p1629_p8, %p1623_p5 }
 0x8dd   :  { %v1195_v53 = vpop.permute.xlu1 %1194 }
 0x8de   :  { %v1197_v54 = vmul.f32 %v1195_v53, %v1192_v51 }
 0x8e0   :  { %v1203_v63 = vadd.f32 %v1202_v60, %v1197_v54 }
 0x8e1   :  { %v1210_v1 = vpop.permute.xlu1 %1209 }
 0x8e2   :  { %v1212_v2 = vmul.f32 %v1210_v1, %v1203_v63  ;;  %v1230_v3 = vmul.f32 %v2162_v32, %v1210_v1 }
 0x8e4   :  { %1214 = vrot.lane.b32.xlu1 %v1212_v2, %s1675_s26  ;;  %v1231_v46 = vsel %vm1217_vm9, %v1230_v3, 0.0 }
 0x8e5   :  { %1232 = vadd.xlane.f32.xlu0 %v1231_v46 }
 0x908   :  { %1227 = vadd.xlane.f32.xlu1 %v1226_v12 }
 0x919   :  { %1250 = vrot.lane.b32.xlu1 %v1203_v63, %s1675_s26 }
 0x956   :  { %v1215_v48 = vpop.permute.xlu1 %1214 }
 0x957   :  { %v1218_v4 = vsel %vm1217_vm9, %v1215_v48, 0.0 }
 0x958   :  { %1219 = vadd.xlane.f32.xlu0 %v1218_v4 }
 0x96e   :  { %1245 = vrot.lane.b32.xlu0 %v1035_v22, %s1675_s26 }
 0x991   :  { %v1228_v32 = vpop.xlane.xlu1 %1227 }
 0x995   :  { %v1251_v20 = vpop.permute.xlu1 %1250 }
 0x996   :  { %1253 = vst.msk [vmem:[#allocation6] sm:$0xf] %vm1217_vm9, %v1251_v20 }
 0x997   :  { %1633 = shalt.err (!%p1630_p9)
}
 0x998   :  { %1284 = dma.vmem_to_hbm [thread:$0]  %s1282_s28, 64, %s2246_s12, [#allocation7]   ;;  %v1233_v38 = vpop.xlane.xlu0 %1232  ;;  %v1369_v24 = vld [vmem:[%s2242_s8 + $0x4] ss:$0 sm:$0xff]  ;;  %vm1242_vm6 = vcmask 3072  }
 0x999   :  { %s1677_s26 = smov [#allocation5]  }
 0x99a   :  { %s1271_s5 = sshll.u32 %s1677_s26, 4  ;;  %s1272_s5 = int_to_ptr.vmem [resolvable:$true] %s1271_s5 }
 0x99b   :  { %s1642_s6 = scalar_lea.vmem %s1272_s5, 64  ;;  %p1647_p11 = scmp.lt.s32.totalorder %s1272_s5, %s1272_s5 }
 0x99c   :  { %p1643_p10 = scmp.ne.s32.totalorder %s1272_s5, %s1642_s6  ;;  %p1648_p12 = scmp.lt.s32.totalorder %s1642_s6, %s1642_s6 }
 0x99e   :  { %p1649_p13 = por %p1648_p12, %p1647_p11 }
 0x9a0   :  { %p1650_p0 = pnand %p1649_p13, %p1643_p10 }
 0x9e1   :  { %v1220_v21 = vpop.xlane.xlu0 %1219 }
 0x9e2   :  { %v1229_v6 = vadd.f32 %v1228_v32, %v1220_v21 }
 0x9e4   :  { %v1234_v9 = vadd.f32 %v1233_v38, %v1229_v6 }
 0x9e5   :  { %v1246_v16 = vpop.permute.xlu0 %1245 }
 0x9e6   :  { %v1241_v45 = vadd.f32 %v1369_v24, %v1234_v9  ;;  %1248 = vst.msk [vmem:[#allocation5] sm:$0xf] %vm1217_vm9, %v1246_v16 }
 0x9e7   :  { %1653 = shalt.err (!%p1650_p0)
}
 0x9e8   :  { %1274 = dma.vmem_to_hbm [thread:$0]  %s1272_s5, 64, %s2245_s11, [#allocation4]   ;;  %1243 = vst.msk [vmem:[%s2244_s10] sm:$0xf] %vm1242_vm6, %v1241_v45 }
 0x9e9   :  { %1664 = dma.done.wait [#allocation4], 64  }
 0x9ea   :  { %1665 = vsyncadd [#allocation4], 4294967232 }
 0x9eb   :  { %1666 = dma.done.wait [#allocation7], 64  }
 0x9ec   :  { %1667 = vsyncadd [#allocation7], 4294967232 }
 0x9ed   :  { %1297 = vsyncpa [#allocation3], 1 }
 0x9ee   :  { %1298 = vsyncpa [#allocation4], 1 }
 0x9ef   :  { %1299 = vsyncpa [#allocation7], 1 }

</bundles_post_ra>
